<compile_context>
chip_gen: v7x
topology: tpu7x:2x2x1
jax: 0.10.0
libtpu: 0.0.40
codegen_flags: <defaults>
</compile_context>

<pallas_src>
import jax
import jax.numpy as jnp
from jax.experimental import pallas as pl
from jax.experimental.pallas import tpu as pltpu

# Stand-ins for AccRescaler's data['std'] / data['mean'] (no .pt load on TPU).
ACC_STD = 0.05
ACC_MEAN = 85.0


def _round_up(x, m):
    return ((x + m - 1) // m) * m


def meta_predict_kernel(gT_ref, w1gT_ref, hdT_ref, p2_ref, *out_refs):
    """One grid step = one tile of tile_c candidate architectures.

    The candidate index is on the LANE axis everywhere, so every vreg is 128-lane dense and
    all stores are lane-dense rows.

    gT_ref:   (NZ, B*tile_c)  bf16  G_mu features, columns b-major within the tile
                                    (column = b*tile_c + c_local)
    w1gT_ref: (HS, NZ)        bf16  transposed G-half of the first-layer weight
    hdT_ref:  (HS, B)         f32   precomputed (D_mu @ W1_d + b1)^T (shared by all candidates)
    p2_ref:   (HS, 2)         f32   col0 = w2, col1 = b2 (broadcast)
    out_refs: (y_ref (1, B, tile_c), acc_ref (1, 1, tile_c)) or just (acc_ref,)
    """
    HS, B = hdT_ref.shape
    tile_rows = gT_ref.shape[1]
    tile_c = tile_rows // B

    # Layer 1 on the MXU (bf16 operands, f32 accumulate), G-half only; D-half is in hdT.
    zT = jnp.dot(w1gT_ref[...], gT_ref[...],
                 preferred_element_type=jnp.float32)               # (HS, B*tile_c) f32

    w2_col = p2_ref[:, 0:1]                                        # (HS, 1)
    b2 = p2_ref[0:1, 1:2]                                          # (1, 1)

    acc_row = jnp.zeros((1, tile_c), jnp.float32)
    for b in range(B):                                             # static unroll (B == 10)
        # Per-replica slab: lane slice at a multiple of tile_c (tile_c % 128 == 0 -> aligned).
        hb = jnp.tanh(zT[:, b * tile_c:(b + 1) * tile_c]
                      + hdT_ref[:, b:b + 1])                       # (HS, tile_c)
        # Layer 2 (HS -> 1) kept off the MXU: VPU scale + XLU sublane reduce -> lane-dense row.
        logit = jnp.sum(hb * w2_col, axis=0, keepdims=True) + b2   # (1, tile_c)
        yb = jax.nn.sigmoid(logit)                                 # (1, tile_c)
        if len(out_refs) == 2:                                     # static trace-time branch
            out_refs[0][0, b:b + 1, :] = yb                        # per-replica predictions
        acc_row = acc_row + yb

    # Per-candidate mean over the B replicas, then AccRescaler: lane-dense (1, tile_c) store.
    mean_row = acc_row * (1.0 / B)
    out_refs[-1][0] = jnp.maximum(100.0 * ACC_STD * mean_row + ACC_MEAN, 0.0)


def meta_predict(d_mu, g_mu, w1, b1, w2, b2, *, tile_c=None, return_y_pred=False):
    """Batched model.predict + per-arch mean + AccRescaler.

    d_mu: (B, NZ)      shared dataset encodings (set_encode output)
    g_mu: (C, B, NZ)   per-candidate graph encodings (graph_encode output)
    w1:   (2*NZ, HS)   fused Linear(2*nz -> hs) weight (x @ W1 convention)
    b1:   (HS,)        first-layer bias
    w2:   (HS, 1)      Linear(hs -> 1) weight
    b2:   ()           second-layer bias
    """
    C, B, NZ = g_mu.shape
    HS = w1.shape[1]
    assert d_mu.shape == (B, NZ) and w1.shape[0] == 2 * NZ

    # Tile sizing: tile_c candidates (B*tile_c fused rows) per grid step.
    #   * multiple of 128 -> lane-aligned slab slices and lane-dense streamed loads
    #   * a single step covers small/medium C; large C gets a handful of big steps
    #     (per-step fixed cost ~0.35us dominates small tiles).
    #   * dimension_semantics=("parallel",) shards the steps over v7x's two TensorCores;
    #     a 1-step grid idles one TC there, but that regime is overhead-dominated anyway.
    #     v5e/v6e have a single TC, so just minimize the step count.
    if tile_c is None:
        cu = _round_up(C, 128)
        tile_c = cu if cu <= 1024 else 512
    tile_c = max(128, _round_up(tile_c, 128))
    tile_c = min(tile_c, _round_up(C, 128))
    c_pad = _round_up(C, tile_c)
    num_tiles = c_pad // tile_c
    tile_rows = tile_c * B

    # Hoist the shared D_mu half out of the per-candidate stream (f32, done once in XLA):
    #   [D_mu ; G_mu] @ W1 + b1 = (D_mu @ W1[:NZ] + b1) + G_mu @ W1[NZ:]
    hd = jnp.dot(d_mu.astype(jnp.float32), w1[:NZ].astype(jnp.float32)) \
        + b1.reshape(1, HS).astype(jnp.float32)                    # (B, HS)
    hdT = hd.T                                                     # (HS, B)

    # Per-candidate stream: bf16, transposed, b-major within each tile so candidates land on
    # lanes: gT[:, t*B*tile_c + b*tile_c + c] = G_mu[t*tile_c + c, b, :]
    g = g_mu.astype(jnp.bfloat16)
    if c_pad != C:
        g = jnp.pad(g, ((0, c_pad - C), (0, 0), (0, 0)))           # padded rows sliced off below
    gT = g.reshape(num_tiles, tile_c, B, NZ).transpose(3, 0, 2, 1).reshape(NZ, c_pad * B)

    w1gT = w1[NZ:].astype(jnp.bfloat16).T                          # (HS, NZ)

    # Small second-stage params packed into one tiny f32 tile: col0 = w2, col1 = b2.
    p2 = jnp.stack(
        [w2.reshape(HS).astype(jnp.float32),
         jnp.broadcast_to(jnp.asarray(b2, jnp.float32).reshape(()), (HS,))],
        axis=1)                                                    # (HS, 2)

    in_specs = [
        pl.BlockSpec((NZ, tile_rows), lambda i: (0, i)),           # gT: streamed per step
        pl.BlockSpec((HS, NZ), lambda i: (0, 0)),                  # w1gT: DMA'd once
        pl.BlockSpec((HS, B), lambda i: (0, 0)),                   # hdT: DMA'd once
        pl.BlockSpec((HS, 2), lambda i: (0, 0)),                   # p2: DMA'd once
    ]

    acc_shape = jax.ShapeDtypeStruct((num_tiles, 1, tile_c), jnp.float32)
    acc_spec = pl.BlockSpec((1, 1, tile_c), lambda i: (i, 0, 0))   # lane-dense acc rows

    if return_y_pred:
        out_shape = (jax.ShapeDtypeStruct((num_tiles, B, tile_c), jnp.float32), acc_shape)
        out_specs = (pl.BlockSpec((1, B, tile_c), lambda i: (i, 0, 0)), acc_spec)
    else:
        out_shape = acc_shape
        out_specs = acc_spec

    result = pl.pallas_call(
        meta_predict_kernel,
        grid=(num_tiles,),
        in_specs=in_specs,
        out_specs=out_specs,
        out_shape=out_shape,
        compiler_params=pltpu.CompilerParams(
            dimension_semantics=("parallel",),        # candidates independent (v7x megacore)
            vmem_limit_bytes=32 * 1024 * 1024,        # > v5e's 16 MiB default scoped VMEM
        ),
    )(gT, w1gT, hdT, p2)

    if return_y_pred:
        y_tiles, acc = result
        # Undo the b-major-within-tile lane ordering: (T, B, tile_c) -> (C, B).
        y_pred = y_tiles.transpose(0, 2, 1).reshape(c_pad, B)[:C]
        return y_pred, acc.reshape(c_pad)[:C]
    return result.reshape(c_pad)[:C]


def reference(d_mu, g_mu, w1, b1, w2, b2):
    C, B, NZ = g_mu.shape
    x = jnp.concatenate([jnp.broadcast_to(d_mu, (C, B, NZ)), g_mu], axis=-1)
    h = jnp.tanh(jnp.einsum("cbk,kh->cbh", x, w1) + b1)
    y = jax.nn.sigmoid(jnp.einsum("cbh,ho->cbo", h, w2) + b2)[..., 0]      # (C, B)
    acc = jnp.maximum(100.0 * ACC_STD * jnp.mean(y, axis=1) + ACC_MEAN, 0.0)
    return y, acc


if __name__ == "__main__":
    B = 10    # forward() always sees a stack of 10 replicas (collect_data loops 10x)
    NZ = 32   # latent size nz
    HS = 64   # hidden size hs
    C = 13    # number of candidate architectures (also exercises the padding path)

    key = jax.random.PRNGKey(0)
    kd, kg, k1, k2, k3, k4 = jax.random.split(key, 6)

    d_mu = jax.random.normal(kd, (B, NZ), dtype=jnp.float32)          # shared set encoding
    g_mu = jax.random.normal(kg, (C, B, NZ), dtype=jnp.float32)       # per-arch graph codes

    w1 = 0.1 * jax.random.normal(k1, (2 * NZ, HS), dtype=jnp.float32)
    b1 = 0.01 * jax.random.normal(k2, (HS,), dtype=jnp.float32)
    w2 = 0.1 * jax.random.normal(k3, (HS, 1), dtype=jnp.float32)
    b2 = 0.01 * jax.random.normal(k4, (), dtype=jnp.float32)

    # Hot path (predictor()): acc only, y_pred store/writeback skipped.
    acc = meta_predict(d_mu, g_mu, w1, b1, w2, b2)
    jax.block_until_ready(acc)

    # forward() path: per-replica predictions too.
    y_pred, acc2 = meta_predict(d_mu, g_mu, w1, b1, w2, b2, return_y_pred=True)
    jax.block_until_ready((y_pred, acc2))

    y_ref, acc_ref = reference(d_mu, g_mu, w1, b1, w2, b2)
    # bf16 MXU operands -> ~1e-3-level error vs the pure-f32 reference (accumulation is f32).
    assert jnp.allclose(y_pred, y_ref, rtol=2e-2, atol=2e-2)
    assert jnp.allclose(acc, acc_ref, rtol=2e-3, atol=5e-2)
    assert jnp.allclose(acc2, acc_ref, rtol=2e-3, atol=5e-2)

    print("KERNEL_OK")
</pallas_src>

<mosaic_0001>
module attributes {stable_mosaic.version = 11 : i64} {
  func.func @meta_predict_kernel(%arg0: i32, %arg1: memref<32x1280xbf16, #tpu.memory_space<vmem>>, %arg2: memref<64x32xbf16, #tpu.memory_space<vmem>>, %arg3: memref<64x10xf32, #tpu.memory_space<vmem>>, %arg4: memref<64x2xf32, #tpu.memory_space<vmem>>, %arg5: memref<1x1x128xf32, #tpu.memory_space<vmem>>) attributes {dimension_semantics = [#tpu.dimension_semantics<parallel>], iteration_bounds = array<i64: 1>, scalar_prefetch = 0 : i64, scratch_operands = 0 : i64, tpu.core_type = #tpu.core_type<tc>, window_params = [{transform_indices = @transform_0, window_bounds = array<i64: 32, 1280>}, {pipeline_mode = #tpu.pipeline_mode<synchronous>, transform_indices = @transform_1, window_bounds = array<i64: 64, 32>}, {pipeline_mode = #tpu.pipeline_mode<synchronous>, transform_indices = @transform_2, window_bounds = array<i64: 64, 10>}, {pipeline_mode = #tpu.pipeline_mode<synchronous>, transform_indices = @transform_3, window_bounds = array<i64: 64, 2>}, {transform_indices = @transform_4, window_bounds = array<i64: 1, 1, 128>}]} {
    %c0 = arith.constant 0 : index
    %c0_0 = arith.constant 0 : index
    %0 = vector.load %arg2[%c0, %c0_0] : memref<64x32xbf16, #tpu.memory_space<vmem>>, vector<64x32xbf16>
    %c0_1 = arith.constant 0 : index
    %c0_2 = arith.constant 0 : index
    %1 = vector.load %arg1[%c0_1, %c0_2] : memref<32x1280xbf16, #tpu.memory_space<vmem>>, vector<32x1280xbf16>
    %cst = arith.constant dense<0.000000e+00> : vector<64x1280xf32>
    %2 = tpu.matmul %0, %1, %cst {dimension_numbers = #tpu.dot_dimension_numbers<[1], [0], [0], [1], [0, 0, 1, 1], [], []>} : vector<64x32xbf16>, vector<32x1280xbf16>, vector<64x1280xf32> -> vector<64x1280xf32>
    %c0_3 = arith.constant 0 : index
    %c0_4 = arith.constant 0 : index
    %3 = vector.load %arg4[%c0_3, %c0_4] : memref<64x2xf32, #tpu.memory_space<vmem>>, vector<64x1xf32>
    %c0_5 = arith.constant 0 : index
    %c1 = arith.constant 1 : index
    %4 = vector.load %arg4[%c0_5, %c1] : memref<64x2xf32, #tpu.memory_space<vmem>>, vector<1x1xf32>
    %cst_6 = arith.constant 0.000000e+00 : f32
    %5 = vector.broadcast %cst_6 : f32 to vector<1x128xf32>
    %6 = vector.extract_strided_slice %2 {offsets = [0, 0], sizes = [64, 128], strides = [1, 1]} : vector<64x1280xf32> to vector<64x128xf32>
    %c0_7 = arith.constant 0 : index
    %c0_8 = arith.constant 0 : index
    %7 = vector.load %arg3[%c0_7, %c0_8] : memref<64x10xf32, #tpu.memory_space<vmem>>, vector<64x1xf32>
    %8 = vector.broadcast %7 : vector<64x1xf32> to vector<64x128xf32>
    %9 = arith.addf %6, %8 : vector<64x128xf32>
    %10 = math.tanh %9 : vector<64x128xf32>
    %11 = vector.broadcast %3 : vector<64x1xf32> to vector<64x128xf32>
    %12 = arith.mulf %10, %11 : vector<64x128xf32>
    %cst_9 = arith.constant dense<0.000000e+00> : vector<128xf32>
    %13 = vector.multi_reduction <add>, %12, %cst_9 [0] : vector<64x128xf32> to vector<128xf32>
    %14 = vector.shape_cast %13 : vector<128xf32> to vector<1x128xf32>
    %15 = vector.broadcast %4 : vector<1x1xf32> to vector<1x128xf32>
    %16 = arith.addf %14, %15 : vector<1x128xf32>
    %17 = arith.negf %16 : vector<1x128xf32>
    %18 = math.exp %17 : vector<1x128xf32>
    %cst_10 = arith.constant 1.000000e+00 : f32
    %19 = vector.broadcast %cst_10 : f32 to vector<1x128xf32>
    %20 = arith.addf %19, %18 : vector<1x128xf32>
    %21 = arith.divf %19, %20 : vector<1x128xf32>
    %22 = arith.addf %5, %21 : vector<1x128xf32>
    %23 = vector.extract_strided_slice %2 {offsets = [0, 128], sizes = [64, 128], strides = [1, 1]} : vector<64x1280xf32> to vector<64x128xf32>
    %c0_11 = arith.constant 0 : index
    %c1_12 = arith.constant 1 : index
    %24 = vector.load %arg3[%c0_11, %c1_12] : memref<64x10xf32, #tpu.memory_space<vmem>>, vector<64x1xf32>
    %25 = vector.broadcast %24 : vector<64x1xf32> to vector<64x128xf32>
    %26 = arith.addf %23, %25 : vector<64x128xf32>
    %27 = math.tanh %26 : vector<64x128xf32>
    %28 = vector.broadcast %3 : vector<64x1xf32> to vector<64x128xf32>
    %29 = arith.mulf %27, %28 : vector<64x128xf32>
    %cst_13 = arith.constant dense<0.000000e+00> : vector<128xf32>
    %30 = vector.multi_reduction <add>, %29, %cst_13 [0] : vector<64x128xf32> to vector<128xf32>
    %31 = vector.shape_cast %30 : vector<128xf32> to vector<1x128xf32>
    %32 = vector.broadcast %4 : vector<1x1xf32> to vector<1x128xf32>
    %33 = arith.addf %31, %32 : vector<1x128xf32>
    %34 = arith.negf %33 : vector<1x128xf32>
    %35 = math.exp %34 : vector<1x128xf32>
    %cst_14 = arith.constant 1.000000e+00 : f32
    %36 = vector.broadcast %cst_14 : f32 to vector<1x128xf32>
    %37 = arith.addf %36, %35 : vector<1x128xf32>
    %38 = arith.divf %36, %37 : vector<1x128xf32>
    %39 = arith.addf %22, %38 : vector<1x128xf32>
    %40 = vector.extract_strided_slice %2 {offsets = [0, 256], sizes = [64, 128], strides = [1, 1]} : vector<64x1280xf32> to vector<64x128xf32>
    %c0_15 = arith.constant 0 : index
    %c2 = arith.constant 2 : index
    %41 = vector.load %arg3[%c0_15, %c2] : memref<64x10xf32, #tpu.memory_space<vmem>>, vector<64x1xf32>
    %42 = vector.broadcast %41 : vector<64x1xf32> to vector<64x128xf32>
    %43 = arith.addf %40, %42 : vector<64x128xf32>
    %44 = math.tanh %43 : vector<64x128xf32>
    %45 = vector.broadcast %3 : vector<64x1xf32> to vector<64x128xf32>
    %46 = arith.mulf %44, %45 : vector<64x128xf32>
    %cst_16 = arith.constant dense<0.000000e+00> : vector<128xf32>
    %47 = vector.multi_reduction <add>, %46, %cst_16 [0] : vector<64x128xf32> to vector<128xf32>
    %48 = vector.shape_cast %47 : vector<128xf32> to vector<1x128xf32>
    %49 = vector.broadcast %4 : vector<1x1xf32> to vector<1x128xf32>
    %50 = arith.addf %48, %49 : vector<1x128xf32>
    %51 = arith.negf %50 : vector<1x128xf32>
    %52 = math.exp %51 : vector<1x128xf32>
    %cst_17 = arith.constant 1.000000e+00 : f32
    %53 = vector.broadcast %cst_17 : f32 to vector<1x128xf32>
    %54 = arith.addf %53, %52 : vector<1x128xf32>
    %55 = arith.divf %53, %54 : vector<1x128xf32>
    %56 = arith.addf %39, %55 : vector<1x128xf32>
    %57 = vector.extract_strided_slice %2 {offsets = [0, 384], sizes = [64, 128], strides = [1, 1]} : vector<64x1280xf32> to vector<64x128xf32>
    %c0_18 = arith.constant 0 : index
    %c3 = arith.constant 3 : index
    %58 = vector.load %arg3[%c0_18, %c3] : memref<64x10xf32, #tpu.memory_space<vmem>>, vector<64x1xf32>
    %59 = vector.broadcast %58 : vector<64x1xf32> to vector<64x128xf32>
    %60 = arith.addf %57, %59 : vector<64x128xf32>
    %61 = math.tanh %60 : vector<64x128xf32>
    %62 = vector.broadcast %3 : vector<64x1xf32> to vector<64x128xf32>
    %63 = arith.mulf %61, %62 : vector<64x128xf32>
    %cst_19 = arith.constant dense<0.000000e+00> : vector<128xf32>
    %64 = vector.multi_reduction <add>, %63, %cst_19 [0] : vector<64x128xf32> to vector<128xf32>
    %65 = vector.shape_cast %64 : vector<128xf32> to vector<1x128xf32>
    %66 = vector.broadcast %4 : vector<1x1xf32> to vector<1x128xf32>
    %67 = arith.addf %65, %66 : vector<1x128xf32>
    %68 = arith.negf %67 : vector<1x128xf32>
    %69 = math.exp %68 : vector<1x128xf32>
    %cst_20 = arith.constant 1.000000e+00 : f32
    %70 = vector.broadcast %cst_20 : f32 to vector<1x128xf32>
    %71 = arith.addf %70, %69 : vector<1x128xf32>
    %72 = arith.divf %70, %71 : vector<1x128xf32>
    %73 = arith.addf %56, %72 : vector<1x128xf32>
    %74 = vector.extract_strided_slice %2 {offsets = [0, 512], sizes = [64, 128], strides = [1, 1]} : vector<64x1280xf32> to vector<64x128xf32>
    %c0_21 = arith.constant 0 : index
    %c4 = arith.constant 4 : index
    %75 = vector.load %arg3[%c0_21, %c4] : memref<64x10xf32, #tpu.memory_space<vmem>>, vector<64x1xf32>
    %76 = vector.broadcast %75 : vector<64x1xf32> to vector<64x128xf32>
    %77 = arith.addf %74, %76 : vector<64x128xf32>
    %78 = math.tanh %77 : vector<64x128xf32>
    %79 = vector.broadcast %3 : vector<64x1xf32> to vector<64x128xf32>
    %80 = arith.mulf %78, %79 : vector<64x128xf32>
    %cst_22 = arith.constant dense<0.000000e+00> : vector<128xf32>
    %81 = vector.multi_reduction <add>, %80, %cst_22 [0] : vector<64x128xf32> to vector<128xf32>
    %82 = vector.shape_cast %81 : vector<128xf32> to vector<1x128xf32>
    %83 = vector.broadcast %4 : vector<1x1xf32> to vector<1x128xf32>
    %84 = arith.addf %82, %83 : vector<1x128xf32>
    %85 = arith.negf %84 : vector<1x128xf32>
    %86 = math.exp %85 : vector<1x128xf32>
    %cst_23 = arith.constant 1.000000e+00 : f32
    %87 = vector.broadcast %cst_23 : f32 to vector<1x128xf32>
    %88 = arith.addf %87, %86 : vector<1x128xf32>
    %89 = arith.divf %87, %88 : vector<1x128xf32>
    %90 = arith.addf %73, %89 : vector<1x128xf32>
    %91 = vector.extract_strided_slice %2 {offsets = [0, 640], sizes = [64, 128], strides = [1, 1]} : vector<64x1280xf32> to vector<64x128xf32>
    %c0_24 = arith.constant 0 : index
    %c5 = arith.constant 5 : index
    %92 = vector.load %arg3[%c0_24, %c5] : memref<64x10xf32, #tpu.memory_space<vmem>>, vector<64x1xf32>
    %93 = vector.broadcast %92 : vector<64x1xf32> to vector<64x128xf32>
    %94 = arith.addf %91, %93 : vector<64x128xf32>
    %95 = math.tanh %94 : vector<64x128xf32>
    %96 = vector.broadcast %3 : vector<64x1xf32> to vector<64x128xf32>
    %97 = arith.mulf %95, %96 : vector<64x128xf32>
    %cst_25 = arith.constant dense<0.000000e+00> : vector<128xf32>
    %98 = vector.multi_reduction <add>, %97, %cst_25 [0] : vector<64x128xf32> to vector<128xf32>
    %99 = vector.shape_cast %98 : vector<128xf32> to vector<1x128xf32>
    %100 = vector.broadcast %4 : vector<1x1xf32> to vector<1x128xf32>
    %101 = arith.addf %99, %100 : vector<1x128xf32>
    %102 = arith.negf %101 : vector<1x128xf32>
    %103 = math.exp %102 : vector<1x128xf32>
    %cst_26 = arith.constant 1.000000e+00 : f32
    %104 = vector.broadcast %cst_26 : f32 to vector<1x128xf32>
    %105 = arith.addf %104, %103 : vector<1x128xf32>
    %106 = arith.divf %104, %105 : vector<1x128xf32>
    %107 = arith.addf %90, %106 : vector<1x128xf32>
    %108 = vector.extract_strided_slice %2 {offsets = [0, 768], sizes = [64, 128], strides = [1, 1]} : vector<64x1280xf32> to vector<64x128xf32>
    %c0_27 = arith.constant 0 : index
    %c6 = arith.constant 6 : index
    %109 = vector.load %arg3[%c0_27, %c6] : memref<64x10xf32, #tpu.memory_space<vmem>>, vector<64x1xf32>
    %110 = vector.broadcast %109 : vector<64x1xf32> to vector<64x128xf32>
    %111 = arith.addf %108, %110 : vector<64x128xf32>
    %112 = math.tanh %111 : vector<64x128xf32>
    %113 = vector.broadcast %3 : vector<64x1xf32> to vector<64x128xf32>
    %114 = arith.mulf %112, %113 : vector<64x128xf32>
    %cst_28 = arith.constant dense<0.000000e+00> : vector<128xf32>
    %115 = vector.multi_reduction <add>, %114, %cst_28 [0] : vector<64x128xf32> to vector<128xf32>
    %116 = vector.shape_cast %115 : vector<128xf32> to vector<1x128xf32>
    %117 = vector.broadcast %4 : vector<1x1xf32> to vector<1x128xf32>
    %118 = arith.addf %116, %117 : vector<1x128xf32>
    %119 = arith.negf %118 : vector<1x128xf32>
    %120 = math.exp %119 : vector<1x128xf32>
    %cst_29 = arith.constant 1.000000e+00 : f32
    %121 = vector.broadcast %cst_29 : f32 to vector<1x128xf32>
    %122 = arith.addf %121, %120 : vector<1x128xf32>
    %123 = arith.divf %121, %122 : vector<1x128xf32>
    %124 = arith.addf %107, %123 : vector<1x128xf32>
    %125 = vector.extract_strided_slice %2 {offsets = [0, 896], sizes = [64, 128], strides = [1, 1]} : vector<64x1280xf32> to vector<64x128xf32>
    %c0_30 = arith.constant 0 : index
    %c7 = arith.constant 7 : index
    %126 = vector.load %arg3[%c0_30, %c7] : memref<64x10xf32, #tpu.memory_space<vmem>>, vector<64x1xf32>
    %127 = vector.broadcast %126 : vector<64x1xf32> to vector<64x128xf32>
    %128 = arith.addf %125, %127 : vector<64x128xf32>
    %129 = math.tanh %128 : vector<64x128xf32>
    %130 = vector.broadcast %3 : vector<64x1xf32> to vector<64x128xf32>
    %131 = arith.mulf %129, %130 : vector<64x128xf32>
    %cst_31 = arith.constant dense<0.000000e+00> : vector<128xf32>
    %132 = vector.multi_reduction <add>, %131, %cst_31 [0] : vector<64x128xf32> to vector<128xf32>
    %133 = vector.shape_cast %132 : vector<128xf32> to vector<1x128xf32>
    %134 = vector.broadcast %4 : vector<1x1xf32> to vector<1x128xf32>
    %135 = arith.addf %133, %134 : vector<1x128xf32>
    %136 = arith.negf %135 : vector<1x128xf32>
    %137 = math.exp %136 : vector<1x128xf32>
    %cst_32 = arith.constant 1.000000e+00 : f32
    %138 = vector.broadcast %cst_32 : f32 to vector<1x128xf32>
    %139 = arith.addf %138, %137 : vector<1x128xf32>
    %140 = arith.divf %138, %139 : vector<1x128xf32>
    %141 = arith.addf %124, %140 : vector<1x128xf32>
    %142 = vector.extract_strided_slice %2 {offsets = [0, 1024], sizes = [64, 128], strides = [1, 1]} : vector<64x1280xf32> to vector<64x128xf32>
    %c0_33 = arith.constant 0 : index
    %c8 = arith.constant 8 : index
    %143 = vector.load %arg3[%c0_33, %c8] : memref<64x10xf32, #tpu.memory_space<vmem>>, vector<64x1xf32>
    %144 = vector.broadcast %143 : vector<64x1xf32> to vector<64x128xf32>
    %145 = arith.addf %142, %144 : vector<64x128xf32>
    %146 = math.tanh %145 : vector<64x128xf32>
    %147 = vector.broadcast %3 : vector<64x1xf32> to vector<64x128xf32>
    %148 = arith.mulf %146, %147 : vector<64x128xf32>
    %cst_34 = arith.constant dense<0.000000e+00> : vector<128xf32>
    %149 = vector.multi_reduction <add>, %148, %cst_34 [0] : vector<64x128xf32> to vector<128xf32>
    %150 = vector.shape_cast %149 : vector<128xf32> to vector<1x128xf32>
    %151 = vector.broadcast %4 : vector<1x1xf32> to vector<1x128xf32>
    %152 = arith.addf %150, %151 : vector<1x128xf32>
    %153 = arith.negf %152 : vector<1x128xf32>
    %154 = math.exp %153 : vector<1x128xf32>
    %cst_35 = arith.constant 1.000000e+00 : f32
    %155 = vector.broadcast %cst_35 : f32 to vector<1x128xf32>
    %156 = arith.addf %155, %154 : vector<1x128xf32>
    %157 = arith.divf %155, %156 : vector<1x128xf32>
    %158 = arith.addf %141, %157 : vector<1x128xf32>
    %159 = vector.extract_strided_slice %2 {offsets = [0, 1152], sizes = [64, 128], strides = [1, 1]} : vector<64x1280xf32> to vector<64x128xf32>
    %c0_36 = arith.constant 0 : index
    %c9 = arith.constant 9 : index
    %160 = vector.load %arg3[%c0_36, %c9] : memref<64x10xf32, #tpu.memory_space<vmem>>, vector<64x1xf32>
    %161 = vector.broadcast %160 : vector<64x1xf32> to vector<64x128xf32>
    %162 = arith.addf %159, %161 : vector<64x128xf32>
    %163 = math.tanh %162 : vector<64x128xf32>
    %164 = vector.broadcast %3 : vector<64x1xf32> to vector<64x128xf32>
    %165 = arith.mulf %163, %164 : vector<64x128xf32>
    %cst_37 = arith.constant dense<0.000000e+00> : vector<128xf32>
    %166 = vector.multi_reduction <add>, %165, %cst_37 [0] : vector<64x128xf32> to vector<128xf32>
    %167 = vector.shape_cast %166 : vector<128xf32> to vector<1x128xf32>
    %168 = vector.broadcast %4 : vector<1x1xf32> to vector<1x128xf32>
    %169 = arith.addf %167, %168 : vector<1x128xf32>
    %170 = arith.negf %169 : vector<1x128xf32>
    %171 = math.exp %170 : vector<1x128xf32>
    %cst_38 = arith.constant 1.000000e+00 : f32
    %172 = vector.broadcast %cst_38 : f32 to vector<1x128xf32>
    %173 = arith.addf %172, %171 : vector<1x128xf32>
    %174 = arith.divf %172, %173 : vector<1x128xf32>
    %175 = arith.addf %158, %174 : vector<1x128xf32>
    %cst_39 = arith.constant 1.000000e-01 : f32
    %176 = vector.broadcast %cst_39 : f32 to vector<1x128xf32>
    %177 = arith.mulf %175, %176 : vector<1x128xf32>
    %cst_40 = arith.constant 5.000000e+00 : f32
    %178 = vector.broadcast %cst_40 : f32 to vector<1x128xf32>
    %179 = arith.mulf %178, %177 : vector<1x128xf32>
    %cst_41 = arith.constant 8.500000e+01 : f32
    %180 = vector.broadcast %cst_41 : f32 to vector<1x128xf32>
    %181 = arith.addf %179, %180 : vector<1x128xf32>
    %cst_42 = arith.constant 0.000000e+00 : f32
    %182 = vector.broadcast %cst_42 : f32 to vector<1x128xf32>
    %183 = arith.maximumf %181, %182 : vector<1x128xf32>
    %c0_43 = arith.constant 0 : index
    %c0_44 = arith.constant 0 : index
    %c0_45 = arith.constant 0 : index
    %184 = vector.load %arg5[%c0_43, %c0_44, %c0_45] : memref<1x1x128xf32, #tpu.memory_space<vmem>>, vector<1x1x128xf32>
    %185 = vector.shape_cast %184 : vector<1x1x128xf32> to vector<1x128xf32>
    %186 = vector.shape_cast %183 : vector<1x128xf32> to vector<1x1x128xf32>
    tpu.vector_store %arg5[%c0_43, %c0_44, %c0_45], %186 {strides = array<i32>} : memref<1x1x128xf32, #tpu.memory_space<vmem>>, vector<1x1x128xf32>,
    return
  }
  func.func @transform_0(%arg0: i32) -> (i32, i32) {
    %c0_i32 = arith.constant 0 : i32
    %c0_i32_0 = arith.constant 0 : i32
    return %c0_i32, %arg0 : i32, i32
  }
  func.func @transform_1(%arg0: i32) -> (i32, i32) {
    %c0_i32 = arith.constant 0 : i32
    %c0_i32_0 = arith.constant 0 : i32
    %c0_i32_1 = arith.constant 0 : i32
    return %c0_i32, %c0_i32_0 : i32, i32
  }
  func.func @transform_2(%arg0: i32) -> (i32, i32) {
    %c0_i32 = arith.constant 0 : i32
    %c0_i32_0 = arith.constant 0 : i32
    %c0_i32_1 = arith.constant 0 : i32
    return %c0_i32, %c0_i32_0 : i32, i32
  }
  func.func @transform_3(%arg0: i32) -> (i32, i32) {
    %c0_i32 = arith.constant 0 : i32
    %c0_i32_0 = arith.constant 0 : i32
    %c0_i32_1 = arith.constant 0 : i32
    return %c0_i32, %c0_i32_0 : i32, i32
  }
  func.func @transform_4(%arg0: i32) -> (i32, i32, i32) {
    %c0_i32 = arith.constant 0 : i32
    %c0_i32_0 = arith.constant 0 : i32
    %c0_i32_1 = arith.constant 0 : i32
    return %arg0, %c0_i32, %c0_i32_0 : i32, i32, i32
  }
}

</mosaic_0001>

<bundles_post_ra>
// kernel: tpu_custom_call.1
= control target key start
LH: loop header
LB: loop body
LE: loop exit
PB: predicated region body
PF: predicated region fallthrough
CT: control target
= control target key end

     0   :  { %v1771_v2 = vmov 0   ;;  %vm167_vm0 = vcmask 261120   ;;  %s2480_s0 = inlined_call_operand.vmem [shape: bf16[32,1280], index: 0, kind: input, shape index: {}]   ;;  %s2481_s1 = inlined_call_operand.vmem [shape: bf16[64,32], index: 1, kind: input, shape index: {}]   ;;  %s2482_s2 = inlined_call_operand.vmem [shape: f32[64,10], index: 2, kind: input, shape index: {}]   ;;  %s2483_s3 = inlined_call_operand.vmem [shape: f32[64,2], index: 3, kind: input, shape index: {}]   ;;  %s2484_s4 = inlined_call_operand.hbm [shape: f32[1,1,128], index: 4, kind: output, shape index: {}]  }
   0x1   :  { %v1810_v0 = vld [vmem:[%s2482_s2 + $0x10] sm:$0xff]  ;;  %v1815_v1 = vld [vmem:[%s2482_s2] sm:$0xff]  ;;  %1474 = vset.pattern.permute.xlu1 %v1771_v2  ;;  %1473 = vset.pattern.permute.xlu0 %v1771_v2  ;;  %v1830_v5 = vld [vmem:[%s2482_s2 + $0x18] sm:$0xff] }
   0x2   :  { %v1513_v3 = vld [vmem:[%s2480_s0 + $0x4] ss:$40 sps:$4 sm:$0xff]   ;;  %v1515_v4 = vld [vmem:[%s2480_s0] ss:$40 sps:$4 sm:$0xff]   ;;  %574 = vperm.xlu1 %1474, %v1810_v0   ;;  %564 = vperm.xlu0 %1473, %v1815_v1   ;;  %v1516_v7 = vld [vmem:[%s2480_s0 + $0x54] ss:$40 sps:$4 sm:$0xff]  }
   0x3   :  { %180 = vmatprep.subr.bf16.mxu0 %v1513_v3  ;;  %1458 = vmatprep.subr.bf16.mxu1 %v1513_v3  ;;  %v1835_v6 = vld [vmem:[%s2482_s2 + $0x8] sm:$0xff]  ;;  %v1518_v8 = vld [vmem:[%s2480_s0 + $0x50] ss:$40 sps:$4 sm:$0xff]   ;;  %v1855_v10 = vld [vmem:[%s2482_s2 + $0x20] sm:$0xff] }
   0x4   :  { %181 = vmatpush1.bf16.msra.mxu0 %v1515_v4  ;;  %1460 = vmatpush1.bf16.msra.mxu1 %v1515_v4  ;;  %v1848_v9 = vld [vmem:[%s2482_s2 + $0x28] sm:$0xff]  ;;  %v1860_v11 = vld [vmem:[%s2481_s1] sm:$0xff]   ;;  %v1865_v12 = vld [vmem:[%s2481_s1 + $0x10] sm:$0xff]  }
   0x5   :  { %182 = vmatprep.subr.bf16.mxu0 %v1516_v7  ;;  %1459 = vmatprep.subr.bf16.mxu1 %v1516_v7  ;;  %v1870_v13 = vld [vmem:[%s2482_s2 + $0x38] sm:$0xff]  ;;  %v1875_v14 = vld [vmem:[%s2482_s2 + $0x30] sm:$0xff]  ;;  %v546_v19 = vld [vmem:[%s2483_s3 + $0x8] sm:$0xff] }
   0x6   :  { %579 = vperm.xlu1 %1474, %v1830_v5   ;;  %569 = vperm.xlu0 %1473, %v1835_v6   ;;  %v1523_v15 = vld [vmem:[%s2480_s0 + $0x8] ss:$40 sps:$4 sm:$0xff]   ;;  %v1525_v16 = vld [vmem:[%s2480_s0 + $0xc] ss:$40 sps:$4 sm:$0xff]   ;;  %v545_v20 = vld [vmem:[%s2483_s3] sm:$0xff] }
   0x7   :  { %212 = vmatprep.mubr.bf16.mxu0 %v1771_v2  ;;  %232 = vmatprep.mubr.bf16.mxu1 %v1771_v2  ;;  %v1526_v17 = vld [vmem:[%s2480_s0 + $0x10] ss:$40 sps:$4 sm:$0xff]   ;;  %v1528_v18 = vld [vmem:[%s2480_s0 + $0x14] ss:$40 sps:$4 sm:$0xff]   ;;  %v1908_v21 = vld [vmem:[%s2481_s1 + $0x8] sm:$0xff]  }
   0x8   :  { %183 = vmatpush1.bf16.msra.mxu0 %v1518_v8  ;;  %1461 = vmatpush1.bf16.msra.mxu1 %v1518_v8  ;;  %v1531_v22 = vld [vmem:[%s2480_s0 + $0x5c] ss:$40 sps:$4 sm:$0xff]   ;;  %v1529_v25 = vld [vmem:[%s2480_s0 + $0x58] ss:$40 sps:$4 sm:$0xff]   ;;  %v547_v28 = vld [vmem:[%s2483_s3 + $0x10] sm:$0xff] }
   0x9   :  { %253 = vmatprep.subr.bf16.mxu1 %v1525_v16  ;;  %v1916_v23 = vld [vmem:[%s2481_s1 + $0x18] sm:$0xff]   ;;  %326 = vmatprep.subr.bf16.mxu0 %v1528_v18  ;;  %v1534_v24 = vld [vmem:[%s2480_s0 + $0x64] ss:$40 sps:$4 sm:$0xff]   ;;  %v1532_v26 = vld [vmem:[%s2480_s0 + $0x60] ss:$40 sps:$4 sm:$0xff]  }
   0xa   :  { %589 = vperm.xlu1 %1474, %v1848_v9   ;;  %584 = vperm.xlu0 %1473, %v1855_v10   ;;  %v548_v27 = vld [vmem:[%s2483_s3 + $0x18] sm:$0xff]  ;;  %v1540_v30 = vld [vmem:[%s2480_s0 + $0x24] ss:$40 sps:$4 sm:$0xff]  }
   0xb   :  { %1428 = vmatmul.mubr.msk.bf16.vlgmr.msra.gmra.mrb[0].mxu0 %vm167_vm0, %v1860_v11  ;;  %1430 = vmatmul.mubr.msk.bf16.vlgmr.msra.gmra.mrb[0].mxu1 %vm167_vm0, %v1865_v12  ;;  %v1537_v29 = vld [vmem:[%s2480_s0 + $0x1c] ss:$40 sps:$4 sm:$0xff]   ;;  %v550_v31 = vld [vmem:[%s2483_s3 + $0x28] sm:$0xff] }
   0xc   :  { %222 = vmatprep.mubr.bf16.mxu0 %v1771_v2  ;;  %242 = vmatprep.mubr.bf16.mxu1 %v1771_v2  ;;  %v549_v32 = vld [vmem:[%s2483_s3 + $0x20] sm:$0xff] }
   0xd   :  { %254 = vmatpush1.bf16.msra.mxu1 %v1523_v15  ;;  %327 = vmatpush1.bf16.msra.mxu0 %v1526_v17 }
   0xe   :  { %599 = vperm.xlu1 %1474, %v1870_v13   ;;  %594 = vperm.xlu0 %1473, %v1875_v14  }
   0xf   :  { %255 = vmatprep.subr.bf16.mxu1 %v1531_v22  ;;  %328 = vmatprep.subr.bf16.mxu0 %v1534_v24 }
  0x11   :  { %256 = vmatpush1.bf16.msra.mxu1 %v1529_v25  ;;  %329 = vmatpush1.bf16.msra.mxu0 %v1532_v26 }
  0x12   :  { %625 = vperm.xlu1 %1474, %v546_v19   ;;  %620 = vperm.xlu0 %1473, %v545_v20  }
  0x13   :  { %1429 = vmatmul.mubr.msk.bf16.gmra.mrb[4].mxu0 %vm167_vm0, %v1908_v21  ;;  %1431 = vmatmul.mubr.msk.bf16.gmra.mrb[4].mxu1 %vm167_vm0, %v1916_v23 }
  0x14   :  { %285 = vmatprep.mubr.bf16.mxu1 %v1771_v2  ;;  %358 = vmatprep.mubr.bf16.mxu0 %v1771_v2 }
  0x15   :  { %399 = vmatprep.subr.bf16.mxu1 %v1537_v29  ;;  %472 = vmatprep.subr.bf16.mxu0 %v1540_v30 }
  0x16   :  { %635 = vperm.xlu1 %1474, %v548_v27   ;;  %630 = vperm.xlu0 %1473, %v547_v28  }
  0x17   :  { %9 = vsyncpa [#allocation3], 0  ;;  %v1535_v33 = vld [vmem:[%s2480_s0 + $0x18] ss:$40 sps:$4 sm:$0xff]   ;;  %v551_v36 = vld [vmem:[%s2483_s3 + $0x30] sm:$0xff]  ;;  %v1772_v42 = vmov 1  }
  0x18   :  { %v1538_v34 = vld [vmem:[%s2480_s0 + $0x20] ss:$40 sps:$4 sm:$0xff]   ;;  %v552_v35 = vld [vmem:[%s2483_s3 + $0x38] sm:$0xff]  ;;  %v1543_v37 = vld [vmem:[%s2480_s0 + $0x6c] ss:$40 sps:$4 sm:$0xff]   ;;  %v1773_v43 = vmov 2  }
  0x19   :  { %v1546_v38 = vld [vmem:[%s2480_s0 + $0x74] ss:$40 sps:$4 sm:$0xff]   ;;  %v1541_v39 = vld [vmem:[%s2480_s0 + $0x68] ss:$40 sps:$4 sm:$0xff]   ;;  %v553_v41 = vld [vmem:[%s2483_s3] sm:$0x1] }
  0x1a   :  { %645 = vperm.xlu1 %1474, %v550_v31   ;;  %640 = vperm.xlu0 %1473, %v549_v32   ;;  %v1544_v40 = vld [vmem:[%s2480_s0 + $0x70] ss:$40 sps:$4 sm:$0xff]   ;;  %v1774_v44 = vmov 3   ;;  %v1775_v45 = vmov 4   ;;  %v1776_v46 = vmov 6   ;;  %v1777_v47 = vmov 9  }
  0x1b   :  { %1432 = vmatmul.mubr.msk.bf16.vlgmr.msra.gmra.mrb[8].mxu1 %vm167_vm0, %v1860_v11  ;;  %1436 = vmatmul.mubr.msk.bf16.vlgmr.msra.gmra.mrb[8].mxu0 %vm167_vm0, %v1860_v11  ;;  %v1778_v48 = vmov 5   ;;  %v1779_v49 = vmov 8   ;;  %v1780_v52 = vmov 7   ;;  %s1781_s0 = smov [#allocation2]  }
  0x1c   :  { %295 = vmatprep.mubr.bf16.mxu1 %v1771_v2  ;;  %368 = vmatprep.mubr.bf16.mxu0 %v1771_v2  ;;  %s1396_s3 = sshll.u32 %s1781_s0, 4  ;;  %s1397_s3 = int_to_ptr.vmem [resolvable:$true] %s1396_s3 }
  0x1d   :  { %400 = vmatpush1.bf16.msra.mxu1 %v1535_v33  ;;  %473 = vmatpush1.bf16.msra.mxu0 %v1538_v34  ;;  %s1747_s15 = scalar_lea.vmem %s1397_s3, 16  ;;  %s1751_s16 = scalar_lea.vmem %s1397_s3, 32 }
  0x1e   :  { %655 = vperm.xlu1 %1474, %v552_v35   ;;  %650 = vperm.xlu0 %1473, %v551_v36   ;;  %p1748_p0 = scmp.ne.s32.totalorder %s1397_s3, %s1747_s15  ;;  %p1752_p1 = scmp.lt.s32.totalorder %s1397_s3, %s1397_s3 }
  0x1f   :  { %401 = vmatprep.subr.bf16.mxu1 %v1543_v37  ;;  %474 = vmatprep.subr.bf16.mxu0 %v1546_v38  ;;  %p1753_p2 = scmp.lt.s32.totalorder %s1751_s16, %s1747_s15 }
  0x21   :  { %402 = vmatpush1.bf16.msra.mxu1 %v1541_v39  ;;  %475 = vmatpush1.bf16.msra.mxu0 %v1544_v40  ;;  %p1754_p3 = por %p1753_p2, %p1752_p1 }
  0x22   :  { %1476 = vset.pattern.permute.xlu1 %v1772_v42  ;;  %1475 = vset.pattern.permute.xlu0 %v1772_v42 }
  0x23   :  { %693 = vperm.xlu1 %1476, %v1815_v1   ;;  %1433 = vmatmul.mubr.msk.bf16.gmra.mrb[12].mxu1 %vm167_vm0, %v1908_v21  ;;  %p1755_p4 = pnand %p1754_p3, %p1748_p0 }
  0x24   :  { %1437 = vmatmul.mubr.msk.bf16.gmra.mrb[12].mxu0 %vm167_vm0, %v1908_v21  ;;  %681 = vperm.xlu0 %1475, %v553_v41  }
  0x25   :  { %305 = vmatprep.mubr.bf16.mxu1 %v1771_v2  ;;  %378 = vmatprep.mubr.bf16.mxu0 %v1771_v2 }
  0x27   :  { %697 = vperm.xlu1 %1476, %v1835_v6  }
  0x28   :  { %701 = vperm.xlu0 %1475, %v1810_v0  }
  0x2b   :  { %705 = vperm.xlu1 %1476, %v1830_v5   ;;  %1434 = vmatmul.mubr.msk.bf16.gmra.mrb[16].mxu1 %vm167_vm0, %v1865_v12 }
  0x2c   :  { %1438 = vmatmul.mubr.msk.bf16.gmra.mrb[16].mxu0 %vm167_vm0, %v1865_v12  ;;  %709 = vperm.xlu0 %1475, %v1855_v10  }
  0x2d   :  { %315 = vmatprep.mubr.bf16.mxu1 %v1771_v2  ;;  %388 = vmatprep.mubr.bf16.mxu0 %v1771_v2 }
  0x2f   :  { %713 = vperm.xlu1 %1476, %v1848_v9  }
  0x30   :  { %717 = vperm.xlu0 %1475, %v1875_v14  }
  0x33   :  { %721 = vperm.xlu1 %1476, %v1870_v13   ;;  %1435 = vmatmul.mubr.msk.bf16.gmra.mrb[20].mxu1 %vm167_vm0, %v1916_v23 }
  0x34   :  { %1439 = vmatmul.mubr.msk.bf16.gmra.mrb[20].mxu0 %vm167_vm0, %v1916_v23  ;;  %1477 = vset.pattern.permute.xlu0 %v1773_v43 }
  0x35   :  { %770 = vperm.xlu0 %1477, %v1815_v1   ;;  %431 = vmatprep.mubr.bf16.mxu1 %v1771_v2 }
  0x36   :  { %504 = vmatprep.mubr.bf16.mxu0 %v1771_v2 }
  0x37   :  { %1478 = vset.pattern.permute.xlu1 %v1773_v43 }
  0x38   :  { %774 = vperm.xlu1 %1478, %v1835_v6  }
  0x39   :  { %782 = vperm.xlu0 %1477, %v1830_v5  }
  0x3b   :  { %1440 = vmatmul.mubr.msk.bf16.vlgmr.msra.gmra.mrb[24].mxu1 %vm167_vm0, %v1860_v11 }
  0x3c   :  { %1444 = vmatmul.mubr.msk.bf16.vlgmr.msra.gmra.mrb[24].mxu0 %vm167_vm0, %v1860_v11  ;;  %778 = vperm.xlu1 %1478, %v1810_v0  }
  0x3d   :  { %790 = vperm.xlu0 %1477, %v1848_v9   ;;  %441 = vmatprep.mubr.bf16.mxu1 %v1771_v2 }
  0x3e   :  { %514 = vmatprep.mubr.bf16.mxu0 %v1771_v2 }
  0x40   :  { %786 = vperm.xlu1 %1478, %v1855_v10  }
  0x41   :  { %798 = vperm.xlu0 %1477, %v1870_v13  }
  0x43   :  { %1441 = vmatmul.mubr.msk.bf16.gmra.mrb[28].mxu1 %vm167_vm0, %v1908_v21 }
  0x44   :  { %1445 = vmatmul.mubr.msk.bf16.gmra.mrb[28].mxu0 %vm167_vm0, %v1908_v21  ;;  %794 = vperm.xlu1 %1478, %v1875_v14  }
  0x45   :  { %1480 = vset.pattern.permute.xlu0 %v1774_v44  ;;  %451 = vmatprep.mubr.bf16.mxu1 %v1771_v2 }
  0x46   :  { %851 = vperm.xlu0 %1480, %v1835_v6   ;;  %524 = vmatprep.mubr.bf16.mxu0 %v1771_v2 }
  0x48   :  { %1479 = vset.pattern.permute.xlu1 %v1774_v44 }
  0x49   :  { %847 = vperm.xlu1 %1479, %v1815_v1  }
  0x4a   :  { %863 = vperm.xlu0 %1480, %v1855_v10  }
  0x4b   :  { %1442 = vmatmul.mubr.msk.bf16.gmra.mrb[32].mxu1 %vm167_vm0, %v1865_v12 }
  0x4c   :  { %1446 = vmatmul.mubr.msk.bf16.gmra.mrb[32].mxu0 %vm167_vm0, %v1865_v12  ;;  %461 = vmatprep.mubr.bf16.mxu1 %v1771_v2 }
  0x4d   :  { %855 = vperm.xlu1 %1479, %v1810_v0   ;;  %534 = vmatprep.mubr.bf16.mxu0 %v1771_v2 }
  0x4e   :  { %871 = vperm.xlu0 %1480, %v1875_v14  }
  0x51   :  { %859 = vperm.xlu1 %1479, %v1830_v5  }
  0x52   :  { %1481 = vset.pattern.permute.xlu0 %v1775_v45 }
  0x53   :  { %924 = vperm.xlu0 %1481, %v1815_v1   ;;  %1443 = vmatmul.mubr.msk.bf16.gmra.mrb[36].mxu1 %vm167_vm0, %v1916_v23 }
  0x54   :  { %1447 = vmatmul.mubr.msk.bf16.gmra.mrb[36].mxu0 %vm167_vm0, %v1916_v23 }
  0x55   :  { %867 = vperm.xlu1 %1479, %v1848_v9  }
  0x57   :  { %936 = vperm.xlu0 %1481, %v1830_v5  }
  0x59   :  { %875 = vperm.xlu1 %1479, %v1870_v13  }
  0x5b   :  { %944 = vperm.xlu0 %1481, %v1848_v9  }
  0x5d   :  { %1482 = vset.pattern.permute.xlu1 %v1775_v45 }
  0x5e   :  { %928 = vperm.xlu1 %1482, %v1835_v6  }
  0x5f   :  { %952 = vperm.xlu0 %1481, %v1870_v13  }
  0x62   :  { %932 = vperm.xlu1 %1482, %v1810_v0  }
  0x63   :  { %1485 = vset.pattern.permute.xlu0 %v1776_v46 }
  0x64   :  { %1082 = vperm.xlu0 %1485, %v1835_v6  }
  0x66   :  { %940 = vperm.xlu1 %1482, %v1855_v10  }
  0x68   :  { %1090 = vperm.xlu0 %1485, %v1830_v5  }
  0x6a   :  { %948 = vperm.xlu1 %1482, %v1875_v14  }
  0x6c   :  { %1496 = vset.pattern.permute.xlu0 %v1777_v47 }
  0x6d   :  { %1313 = vperm.xlu0 %1496, %v1835_v6  }
  0x6e   :  { %1483 = vset.pattern.permute.xlu1 %v1778_v48 }
  0x6f   :  { %1001 = vperm.xlu1 %1483, %v1815_v1  }
  0x71   :  { %1497 = vset.pattern.permute.xlu0 %v1778_v48 }
  0x72   :  { %1005 = vperm.xlu0 %1497, %v1835_v6  }
  0x73   :  { %1009 = vperm.xlu1 %1483, %v1810_v0  }
  0x76   :  { %1029 = vperm.xlu0 %1497, %v1870_v13  }
  0x77   :  { %1484 = vset.pattern.permute.xlu1 %v1776_v46 }
  0x78   :  { %1078 = vperm.xlu1 %1484, %v1815_v1  }
  0x7a   :  { %1502 = vset.pattern.permute.xlu0 %v1779_v49 }
  0x7b   :  { %1236 = vperm.xlu0 %1502, %v1835_v6  }
  0x7c   :  { %1486 = vset.pattern.permute.xlu1 %v1778_v48 }
  0x7d   :  { %1013 = vperm.xlu1 %1486, %v1830_v5  }
  0x7f   :  { %1248 = vperm.xlu0 %1502, %v1855_v10  }
  0x81   :  { %1487 = vset.pattern.permute.xlu1 %v1776_v46  ;;  %v2075_v50 = vpop.permute.xlu1 %574  ;;  %v2077_v51 = vpop.permute.xlu0 %564 }
  0x82   :  { %1086 = vperm.xlu1 %1487, %v1810_v0  }
  0x83   :  { %1505 = vset.pattern.permute.xlu0 %v1780_v52 }
  0x84   :  { %1155 = vperm.xlu0 %1505, %v1815_v1  }
  0x85   :  { %v2082_v53 = vpop.permute.xlu1 %579  ;;  %v2084_v54 = vpop.permute.xlu0 %569 }
  0x86   :  { %1488 = vset.pattern.permute.xlu1 %v1780_v52 }
  0x87   :  { %1159 = vperm.xlu1 %1488, %v1835_v6  }
  0x88   :  { %1167 = vperm.xlu0 %1505, %v1830_v5  }
  0x89   :  { %v2089_v55 = vpop.permute.xlu1 %589  ;;  %v2091_v56 = vpop.permute.xlu0 %584 }
  0x8b   :  { %1489 = vset.pattern.permute.xlu1 %v1778_v48 }
  0x8c   :  { %1017 = vperm.xlu1 %1489, %v1855_v10   ;;  %1171 = vperm.xlu0 %1505, %v1855_v10  }
  0x8d   :  { %v2096_v57 = vpop.permute.xlu1 %599  ;;  %v2098_v58 = vpop.permute.xlu0 %594 }
  0x90   :  { %1490 = vset.pattern.permute.xlu1 %v1780_v52  ;;  %1179 = vperm.xlu0 %1505, %v1875_v14  }
  0x91   :  { %1163 = vperm.xlu1 %1490, %v1810_v0   ;;  %v2103_v59 = vpop.permute.xlu1 %625  ;;  %v2105_v60 = vpop.permute.xlu0 %620 }
  0x94   :  { %1183 = vperm.xlu0 %1505, %v1870_v13  }
  0x95   :  { %1491 = vset.pattern.permute.xlu1 %v1779_v49  ;;  %v2109_v61 = vpop.permute.xlu1 %635  ;;  %v2111_v62 = vpop.permute.xlu0 %630 }
  0x96   :  { %1232 = vperm.xlu1 %1491, %v1815_v1  }
  0x98   :  { %1511 = vset.pattern.permute.xlu0 %v1777_v47 }
  0x99   :  { %v2115_v63 = vpop.permute.xlu1 %645  ;;  %v2117_v2 = vpop.permute.xlu0 %640  ;;  %1329 = vperm.xlu0 %1511, %v1848_v9  }
  0x9a   :  { %1492 = vset.pattern.permute.xlu1 %v1778_v48 }
  0x9b   :  { %1021 = vperm.xlu1 %1492, %v1848_v9  }
  0x9d   :  { %v2122_v3 = vpop.permute.xlu1 %655  ;;  %v2124_v4 = vpop.permute.xlu0 %650  ;;  %1337 = vperm.xlu0 %1511, %v1870_v13  }
  0x9f   :  { %1493 = vset.pattern.permute.xlu1 %v1776_v46 }
  0xa0   :  { %1094 = vperm.xlu1 %1493, %v1855_v10  }
  0xa2   :  { %v694_v6 = vpop.permute.xlu1 %693 }
  0xa3   :  { %v2129_v7 = vpop.permute.xlu0 %681 }
  0xa4   :  { %1494 = vset.pattern.permute.xlu1 %v1779_v49 }
  0xa5   :  { %1240 = vperm.xlu1 %1494, %v1810_v0  }
  0xa6   :  { %v2133_v8 = vpop.permute.xlu1 %697 }
  0xa7   :  { %v2135_v11 = vpop.permute.xlu0 %701 }
  0xa9   :  { %1495 = vset.pattern.permute.xlu1 %v1777_v47 }
  0xaa   :  { %1309 = vperm.xlu1 %1495, %v1815_v1   ;;  %v2139_v12 = vpop.permute.xlu1 %705 }
  0xab   :  { %v710_v15 = vpop.permute.xlu0 %709 }
  0xae   :  { %1498 = vset.pattern.permute.xlu1 %v1778_v48  ;;  %v2142_v16 = vpop.permute.xlu1 %713 }
  0xaf   :  { %1025 = vperm.xlu1 %1498, %v1875_v14   ;;  %v2145_v17 = vpop.permute.xlu0 %717 }
  0xb2   :  { %v2147_v18 = vpop.permute.xlu1 %721 }
  0xb3   :  { %1499 = vset.pattern.permute.xlu1 %v1776_v46 }
  0xb4   :  { %1098 = vperm.xlu1 %1499, %v1848_v9   ;;  %v2151_v19 = vpop.permute.xlu0 %770 }
  0xb7   :  { %v2153_v1 = vpop.permute.xlu1 %774 }
  0xb8   :  { %1500 = vset.pattern.permute.xlu1 %v1779_v49  ;;  %v2156_v20 = vpop.permute.xlu0 %782 }
  0xb9   :  { %1244 = vperm.xlu1 %1500, %v1830_v5  }
  0xbb   :  { %v2159_v21 = vpop.permute.xlu1 %778 }
  0xbc   :  { %v2161_v22 = vpop.permute.xlu0 %790 }
  0xbd   :  { %1501 = vset.pattern.permute.xlu1 %v1777_v47 }
  0xbe   :  { %1317 = vperm.xlu1 %1501, %v1810_v0  }
  0xbf   :  { %v2165_v23 = vpop.permute.xlu1 %786 }
  0xc0   :  { %v2167_v24 = vpop.permute.xlu0 %798 }
  0xc2   :  { %1503 = vset.pattern.permute.xlu1 %v1776_v46 }
  0xc3   :  { %1102 = vperm.xlu1 %1503, %v1875_v14   ;;  %v2171_v25 = vpop.permute.xlu1 %794 }
  0xc5   :  { %v2173_v26 = vpop.permute.xlu0 %851 }
  0xc7   :  { %1504 = vset.pattern.permute.xlu1 %v1780_v52 }
  0xc8   :  { %1175 = vperm.xlu1 %1504, %v1848_v9   ;;  %v2177_v27 = vpop.permute.xlu1 %847 }
  0xc9   :  { %v2179_v28 = vpop.permute.xlu0 %863 }
  0xcc   :  { %1506 = vset.pattern.permute.xlu1 %v1777_v47  ;;  %v2182_v0 = vpop.permute.xlu1 %855 }
  0xcd   :  { %1321 = vperm.xlu1 %1506, %v1830_v5   ;;  %v2185_v29 = vpop.permute.xlu0 %871 }
  0xd0   :  { %v2187_v30 = vpop.permute.xlu1 %859 }
  0xd1   :  { %1507 = vset.pattern.permute.xlu1 %v1776_v46 }
  0xd2   :  { %1106 = vperm.xlu1 %1507, %v1870_v13   ;;  %v2191_v31 = vpop.permute.xlu0 %924 }
  0xd4   :  { %v2193_v32 = vpop.permute.xlu1 %867 }
  0xd6   :  { %1508 = vset.pattern.permute.xlu1 %v1779_v49  ;;  %v2196_v33 = vpop.permute.xlu0 %936 }
  0xd7   :  { %1252 = vperm.xlu1 %1508, %v1848_v9  }
  0xd8   :  { %v2199_v34 = vpop.permute.xlu1 %875 }
  0xda   :  { %v2202_v5 = vpop.permute.xlu0 %944 }
  0xdb   :  { %1509 = vset.pattern.permute.xlu1 %v1777_v47 }
  0xdc   :  { %1325 = vperm.xlu1 %1509, %v1855_v10  }
  0xdd   :  { %v2205_v35 = vpop.permute.xlu1 %928 }
  0xde   :  { %v214_v36 = vpop.f32.mrb[0].mxu0  ;;  %v234_v37 = vpop.f32.mrb[0].mxu1 }
  0xdf   :  { %v602_v38 = vadd.f32 %v2077_v51, %v214_v36  ;;  %v606_v39 = vadd.f32 %v2091_v56, %v234_v37  ;;  %v216_v40 = vpop.f32.mrb[1].mxu0  ;;  %v236_v41 = vpop.f32.mrb[1].mxu1 }
  0xe0   :  { %v724_v42 = vadd.f32 %v694_v6, %v216_v40  ;;  %v728_v9 = vadd.f32 %v710_v15, %v236_v41  ;;  %1510 = vset.pattern.permute.xlu1 %v1779_v49  ;;  %v218_v43 = vpop.f32.mrb[2].mxu0  ;;  %v238_v44 = vpop.f32.mrb[2].mxu1 }
  0xe1   :  { %1547 = vtanh.f32 %v602_v38  ;;  %v603_v45 = vadd.f32 %v2084_v54, %v218_v43  ;;  %1256 = vperm.xlu1 %1510, %v1875_v14   ;;  %v2212_v10 = vpop.permute.xlu1 %932  ;;  %v2214_v46 = vpop.permute.xlu0 %952  ;;  %v607_v48 = vadd.f32 %v2089_v55, %v238_v44 }
  0xe2   :  { %1549 = vtanh.f32 %v606_v39  ;;  %v220_v51 = vpop.f32.mrb[3].mxu0  ;;  %v240_v52 = vpop.f32.mrb[3].mxu1 }
  0xe3   :  { %1551 = vtanh.f32 %v724_v42  ;;  %v725_v56 = vadd.f32 %v2133_v8, %v220_v51  ;;  %v729_v49 = vadd.f32 %v2142_v16, %v240_v52 }
  0xe4   :  { %1553 = vtanh.f32 %v728_v9 }
  0xe5   :  { %1555 = vtanh.f32 %v603_v45  ;;  %1260 = vperm.xlu1 %1510, %v1870_v13   ;;  %v2220_v54 = vpop.permute.xlu1 %940  ;;  %v2222_v6 = vpop.permute.xlu0 %1082 }
  0xe6   :  { %1557 = vtanh.f32 %v607_v48  ;;  %v224_v15 = vpop.f32.mrb[4].mxu0  ;;  %v244_v36 = vpop.f32.mrb[4].mxu1 }
  0xe7   :  { %1559 = vtanh.f32 %v725_v56  ;;  %v604_v55 = vadd.f32 %v2075_v50, %v224_v15  ;;  %v608_v37 = vadd.f32 %v2098_v58, %v244_v36  ;;  %v226_v38 = vpop.f32.mrb[5].mxu0  ;;  %v246_v8 = vpop.f32.mrb[5].mxu1 }
  0xe8   :  { %1561 = vtanh.f32 %v729_v49  ;;  %v726_v16 = vadd.f32 %v2135_v11, %v226_v38  ;;  %v730_v39 = vadd.f32 %v2145_v17, %v246_v8  ;;  %v228_v13 = vpop.f32.mrb[6].mxu0  ;;  %v248_v40 = vpop.f32.mrb[6].mxu1 }
  0xe9   :  { %1563 = vtanh.f32 %v604_v55  ;;  %v605_v41 = vadd.f32 %v2082_v53, %v228_v13  ;;  %1512 = vset.pattern.permute.xlu1 %v1777_v47  ;;  %v2230_v42 = vpop.permute.xlu1 %948  ;;  %v2232_v9 = vpop.permute.xlu0 %1090  ;;  %v609_v50 = vadd.f32 %v2096_v57, %v248_v40 }
  0xea   :  { %1565 = vtanh.f32 %v608_v37  ;;  %v230_v58 = vpop.f32.mrb[7].mxu0  ;;  %v250_v43 = vpop.f32.mrb[7].mxu1  ;;  %1333 = vperm.xlu1 %1512, %v1875_v14  }
  0xeb   :  { %v1548_v11 = vpop.eup %1547  ;;  %1567 = vtanh.f32 %v726_v16  ;;  %v727_v17 = vadd.f32 %v2139_v12, %v230_v58  ;;  %v731_v44 = vadd.f32 %v2147_v18, %v250_v43 }
  0xec   :  { %v1550_v53 = vpop.eup %1549  ;;  %1569 = vtanh.f32 %v730_v39  ;;  %v658_v56 = vmul.f32 %v1548_v11, %v2105_v60 }
  0xed   :  { %v1552_v47 = vpop.eup %1551  ;;  %1571 = vtanh.f32 %v605_v41  ;;  %v2238_v45 = vpop.permute.xlu0 %1313 }
  0xee   :  { %v1554_v48 = vpop.eup %1553  ;;  %1573 = vtanh.f32 %v609_v50  ;;  %v1002_v51 = vpop.permute.xlu1 %1001  ;;  %v740_v16 = vmul.f32 %v1552_v47, %v2105_v60 }
  0xef   :  { %v287_v57 = vpop.f32.mrb[8].mxu1  ;;  %v1556_v52 = vpop.eup %1555  ;;  %1575 = vtanh.f32 %v727_v17 }
  0xf0   :  { %v801_v14 = vadd.f32 %v2151_v19, %v287_v57  ;;  %v360_v49 = vpop.f32.mrb[8].mxu0  ;;  %v289_v12 = vpop.f32.mrb[9].mxu1  ;;  %v659_v18 = vmul.f32 %v1556_v52, %v2103_v59  ;;  %1577 = vtanh.f32 %v731_v44 }
  0xf1   :  { %v1558_v15 = vpop.eup %1557  ;;  %v955_v36 = vadd.f32 %v2191_v31, %v360_v49  ;;  %v878_v55 = vadd.f32 %v2177_v27, %v289_v12  ;;  %v362_v37 = vpop.f32.mrb[9].mxu0 }
  0xf2   :  { %v291_v38 = vpop.f32.mrb[10].mxu1  ;;  %v1560_v8 = vpop.eup %1559  ;;  %1579 = vtanh.f32 %v801_v14  ;;  %v1032_v39 = vadd.f32 %v1002_v51, %v362_v37  ;;  %v666_v50 = vadd.f32 %v659_v18, %v658_v56  ;;  %v662_v56 = vmul.f32 %v1550_v53, %v2117_v2 }
  0xf3   :  { %v802_v13 = vadd.f32 %v2153_v1, %v291_v38  ;;  %v364_v19 = vpop.f32.mrb[10].mxu0  ;;  %v1006_v40 = vpop.permute.xlu0 %1005  ;;  %v741_v58 = vmul.f32 %v1560_v8, %v2103_v59  ;;  %1581 = vtanh.f32 %v955_v36  ;;  %v663_v36 = vmul.f32 %v1558_v15, %v2115_v63 }
  0xf4   :  { %v1562_v41 = vpop.eup %1561  ;;  %v956_v31 = vadd.f32 %v2205_v35, %v364_v19  ;;  %v293_v43 = vpop.f32.mrb[11].mxu1  ;;  %1583 = vtanh.f32 %v878_v55  ;;  %v744_v35 = vmul.f32 %v1554_v48, %v2117_v2 }
  0xf5   :  { %v366_v27 = vpop.f32.mrb[11].mxu0  ;;  %v1564_v11 = vpop.eup %1563  ;;  %v879_v17 = vadd.f32 %v2173_v26, %v293_v43  ;;  %v748_v51 = vadd.f32 %v741_v58, %v740_v16  ;;  %1585 = vtanh.f32 %v1032_v39  ;;  %v745_v55 = vmul.f32 %v1562_v41, %v2115_v63 }
  0xf6   :  { %v1010_v44 = vpop.permute.xlu1 %1009  ;;  %v1566_v47 = vpop.eup %1565  ;;  %v660_v1 = vmul.f32 %v1564_v11, %v2111_v62  ;;  %v1033_v57 = vadd.f32 %v1006_v40, %v366_v27  ;;  %1587 = vtanh.f32 %v802_v13 }
  0xf7   :  { %v1568_v52 = vpop.eup %1567  ;;  %1589 = vtanh.f32 %v956_v31  ;;  %v297_v18 = vpop.f32.mrb[12].mxu1  ;;  %v664_v15 = vmul.f32 %v1566_v47, %v2124_v4 }
  0xf8   :  { %v1570_v14 = vpop.eup %1569  ;;  %v667_v49 = vadd.f32 %v666_v50, %v660_v1  ;;  %v742_v12 = vmul.f32 %v1568_v52, %v2111_v62  ;;  %1591 = vtanh.f32 %v879_v17  ;;  %v803_v37 = vadd.f32 %v2159_v21, %v297_v18  ;;  %v370_v38 = vpop.f32.mrb[12].mxu0 }
  0xf9   :  { %v1572_v26 = vpop.eup %1571  ;;  %1593 = vtanh.f32 %v1033_v57  ;;  %v957_v39 = vadd.f32 %v2212_v10, %v370_v38  ;;  %v299_v13 = vpop.f32.mrb[13].mxu1  ;;  %v746_v1 = vmul.f32 %v1570_v14, %v2124_v4 }
  0xfa   :  { %v2257_v8 = vpop.permute.xlu1 %1078  ;;  %v1574_v53 = vpop.eup %1573  ;;  %v749_v16 = vadd.f32 %v748_v51, %v742_v12  ;;  %v661_v48 = vmul.f32 %v1572_v26, %v2109_v61  ;;  %1595 = vtanh.f32 %v803_v37  ;;  %v880_v41 = vadd.f32 %v2182_v0, %v299_v13 }
  0xfb   :  { %v372_v19 = vpop.f32.mrb[13].mxu0  ;;  %v1576_v40 = vpop.eup %1575  ;;  %1597 = vtanh.f32 %v957_v39  ;;  %v665_v52 = vmul.f32 %v1574_v53, %v2122_v3 }
  0xfc   :  { %v1034_v50 = vadd.f32 %v1010_v44, %v372_v19  ;;  %v301_v21 = vpop.f32.mrb[14].mxu1  ;;  %v374_v58 = vpop.f32.mrb[14].mxu0  ;;  %v668_v43 = vadd.f32 %v667_v49, %v661_v48  ;;  %v743_v27 = vmul.f32 %v1576_v40, %v2109_v61  ;;  %1599 = vtanh.f32 %v880_v41 }
  0xfd   :  { %v1578_v31 = vpop.eup %1577  ;;  %v804_v11 = vadd.f32 %v2156_v20, %v301_v21  ;;  %v303_v17 = vpop.f32.mrb[15].mxu1  ;;  %v958_v47 = vadd.f32 %v2196_v33, %v374_v58 }
  0xfe   :  { %v376_v10 = vpop.f32.mrb[15].mxu0  ;;  %v1580_v51 = vpop.eup %1579  ;;  %v881_v0 = vadd.f32 %v2187_v30, %v303_v17  ;;  %v669_v57 = vadd.f32 %v668_v43, %v662_v56  ;;  %v750_v49 = vadd.f32 %v749_v16, %v743_v27  ;;  %1601 = vtanh.f32 %v1034_v50 }
  0xff   :  { %v1582_v44 = vpop.eup %1581  ;;  %v1014_v12 = vpop.permute.xlu1 %1013  ;;  %v747_v20 = vmul.f32 %v1578_v31, %v2122_v3  ;;  %v817_v26 = vmul.f32 %v1580_v51, %v2105_v60  ;;  %1603 = vtanh.f32 %v804_v11 }
 0x100   :  { %v1584_v18 = vpop.eup %1583  ;;  %v1035_v37 = vadd.f32 %v1014_v12, %v376_v10  ;;  %v670_v38 = vadd.f32 %v669_v57, %v663_v36  ;;  %v751_v48 = vadd.f32 %v750_v49, %v744_v35  ;;  %v971_v33 = vmul.f32 %v1582_v44, %v2105_v60  ;;  %v307_v30 = vpop.f32.mrb[16].mxu1 }
 0x101   :  { %v1586_v14 = vpop.eup %1585  ;;  %1605 = vtanh.f32 %v958_v47  ;;  %v2272_v56 = vpop.permute.xlu0 %1029  ;;  %v894_v16 = vmul.f32 %v1584_v18, %v2105_v60  ;;  %v805_v13 = vadd.f32 %v2165_v23, %v307_v30 }
 0x102   :  { %v1588_v53 = vpop.eup %1587  ;;  %v1048_v39 = vmul.f32 %v1586_v14, %v2105_v60  ;;  %1607 = vtanh.f32 %v881_v0  ;;  %v380_v19 = vpop.f32.mrb[16].mxu0  ;;  %v671_v50 = vadd.f32 %v670_v38, %v664_v15  ;;  %v752_v36 = vadd.f32 %v751_v48, %v745_v55 }
 0x103   :  { %v309_v40 = vpop.f32.mrb[17].mxu1  ;;  %v1590_v41 = vpop.eup %1589  ;;  %v818_v35 = vmul.f32 %v1588_v53, %v2103_v59  ;;  %1609 = vtanh.f32 %v1035_v37  ;;  %v959_v27 = vadd.f32 %v2220_v54, %v380_v19 }
 0x104   :  { %v2278_v21 = vpop.f32.mrb[17].mxu0  ;;  %v311_v58 = vpop.f32.mrb[18].mxu1  ;;  %v972_v43 = vmul.f32 %v1590_v41, %v2103_v59  ;;  %1611 = vtanh.f32 %v805_v13  ;;  %v882_v11 = vadd.f32 %v2179_v28, %v309_v40  ;;  %v672_v15 = vadd.f32 %v671_v50, %v665_v52 }
 0x105   :  { %v1592_v31 = vpop.eup %1591  ;;  %v384_v23 = vpop.f32.mrb[18].mxu0  ;;  %v753_v55 = vadd.f32 %v752_v36, %v746_v1  ;;  %v825_v51 = vadd.f32 %v818_v35, %v817_v26  ;;  %1613 = vtanh.f32 %v959_v27  ;;  %v806_v54 = vadd.f32 %v2161_v22, %v311_v58 }
 0x106   :  { %v2283_v17 = vpop.permute.xlu1 %1086  ;;  %v1594_v10 = vpop.eup %1593  ;;  %v895_v47 = vmul.f32 %v1592_v31, %v2103_v59  ;;  %v979_v49 = vadd.f32 %v972_v43, %v971_v33  ;;  %v673_v18 = vrot.slane %v672_v15, 4  ;;  %1615 = vtanh.f32 %v882_v11 }
 0x107   :  { %v313_v0 = vpop.f32.mrb[19].mxu1  ;;  %v2286_v44 = vpop.f32.mrb[19].mxu0  ;;  %v1049_v12 = vmul.f32 %v1594_v10, %v2103_v59  ;;  %v754_v37 = vadd.f32 %v753_v55, %v747_v20  ;;  %v960_v48 = vadd.f32 %v2202_v5, %v384_v23  ;;  %1617 = vtanh.f32 %v806_v54 }
 0x108   :  { %v1596_v57 = vpop.eup %1595  ;;  %v902_v14 = vadd.f32 %v895_v47, %v894_v16  ;;  %v2293_v30 = vpop.permute.xlu0 %1236  ;;  %v674_v53 = vadd.f32 %v673_v18, %v672_v15  ;;  %v883_v50 = vadd.f32 %v2193_v32, %v313_v0 }
 0x109   :  { %v1598_v28 = vpop.eup %1597  ;;  %v819_v52 = vmul.f32 %v1596_v57, %v2111_v62  ;;  %v1056_v26 = vadd.f32 %v1049_v12, %v1048_v39  ;;  %v755_v13 = vrot.slane %v754_v37, 4  ;;  %v317_v20 = vpop.f32.mrb[20].mxu1  ;;  %1619 = vtanh.f32 %v960_v48 }
 0x10a   :  { %v1600_v1 = vpop.eup %1599  ;;  %v973_v38 = vmul.f32 %v1598_v28, %v2111_v62  ;;  %v2296_v40 = vpop.permute.xlu1 %1159  ;;  %v675_v58 = vrot.slane %v674_v53, 2  ;;  %1621 = vtanh.f32 %v883_v50 }
 0x10b   :  { %v1602_v33 = vpop.eup %1601  ;;  %v826_v19 = vadd.f32 %v825_v51, %v819_v52  ;;  %v896_v22 = vmul.f32 %v1600_v1, %v2111_v62  ;;  %v390_v36 = vpop.f32.mrb[20].mxu0  ;;  %v756_v31 = vadd.f32 %v755_v13, %v754_v37  ;;  %v807_v51 = vadd.f32 %v2171_v25, %v317_v20 }
 0x10c   :  { %v1604_v16 = vpop.eup %1603  ;;  %v980_v41 = vadd.f32 %v979_v49, %v973_v38  ;;  %v1050_v39 = vmul.f32 %v1602_v33, %v2111_v62  ;;  %v319_v5 = vpop.f32.mrb[21].mxu1  ;;  %v676_v57 = vadd.f32 %v675_v58, %v674_v53  ;;  %v961_v52 = vadd.f32 %v2230_v42, %v390_v36 }
 0x10d   :  { %v1606_v35 = vpop.eup %1605  ;;  %v903_v43 = vadd.f32 %v902_v14, %v896_v22  ;;  %v820_v27 = vmul.f32 %v1604_v16, %v2109_v61  ;;  %v2301_v11 = vpop.f32.mrb[21].mxu0  ;;  %v757_v49 = vrot.slane %v756_v31, 2  ;;  %1623 = vtanh.f32 %v807_v51 }
 0x10e   :  { %v321_v23 = vpop.f32.mrb[22].mxu1  ;;  %v1608_v10 = vpop.eup %1607  ;;  %v1057_v15 = vadd.f32 %v1056_v26, %v1050_v39  ;;  %v974_v55 = vmul.f32 %v1606_v35, %v2109_v61  ;;  %v677_v26 = vrot.slane %v676_v57, 1  ;;  %v884_v13 = vadd.f32 %v2185_v29, %v319_v5 }
 0x10f   :  { %v394_v47 = vpop.f32.mrb[22].mxu0  ;;  %v323_v32 = vpop.f32.mrb[23].mxu1  ;;  %v827_v12 = vadd.f32 %v826_v19, %v820_v27  ;;  %v897_v54 = vmul.f32 %v1608_v10, %v2109_v61  ;;  %v758_v25 = vadd.f32 %v757_v49, %v756_v31  ;;  %1625 = vtanh.f32 %v961_v52 }
 0x110   :  { %v1610_v0 = vpop.eup %1609  ;;  %v2306_v28 = vpop.f32.mrb[23].mxu0  ;;  %v981_v37 = vadd.f32 %v980_v41, %v974_v55  ;;  %v678_v19 = vadd.f32 %v677_v26, %v676_v57  ;;  %v808_v50 = vadd.f32 %v2167_v24, %v321_v23  ;;  %v885_v36 = vadd.f32 %v2199_v34, %v323_v32 }
 0x111   :  { %v1612_v18 = vpop.eup %1611  ;;  %v1051_v14 = vmul.f32 %v1610_v0, %v2109_v61  ;;  %v1018_v1 = vpop.permute.xlu1 %1017  ;;  %v904_v38 = vadd.f32 %v903_v43, %v897_v54  ;;  %v759_v22 = vrot.slane %v758_v25, 1  ;;  %1627 = vtanh.f32 %v884_v13 }
 0x112   :  { %v821_v48 = vmul.f32 %v1612_v18, %v2117_v2  ;;  %v1614_v33 = vpop.eup %1613  ;;  %v2315_v41 = vpop.permute.xlu0 %1248  ;;  %v684_v31 = vadd.f32 %v2129_v7, %v678_v19  ;;  %v962_v55 = vadd.f32 %v2214_v46, %v394_v47  ;;  %v1036_v24 = vadd.f32 %v1018_v1, %v2278_v21 }
 0x113   :  { %v2311_v53 = vadd.f32 %v1057_v15, %v1051_v14  ;;  %v975_v16 = vmul.f32 %v1614_v33, %v2117_v2  ;;  %v433_v42 = vpop.f32.mrb[24].mxu1  ;;  %v1616_v39 = vpop.eup %1615  ;;  %v760_v43 = vadd.f32 %v759_v22, %v758_v25  ;;  %1629 = vtanh.f32 %v808_v50 }
 0x114   :  { %v828_v20 = vadd.f32 %v827_v12, %v821_v48  ;;  %v506_v35 = vpop.f32.mrb[24].mxu0  ;;  %v435_v58 = vpop.f32.mrb[25].mxu1  ;;  %v898_v5 = vmul.f32 %v1616_v39, %v2117_v2  ;;  %v1109_v34 = vadd.f32 %v2257_v8, %v433_v42  ;;  %v1448_v32 = vmul.f32 -1.442695, %v684_v31 }
 0x115   :  { %v982_v29 = vadd.f32 %v981_v37, %v975_v16  ;;  %v2321_v27 = vpop.f32.mrb[25].mxu0  ;;  %v2323_v10 = vpop.permute.xlu1 %1163  ;;  %v761_v0 = vadd.f32 %v760_v43, %v2129_v7 }
 0x116   :  { %v1618_v15 = vpop.eup %1617  ;;  %v437_v23 = vpop.f32.mrb[26].mxu1  ;;  %v905_v57 = vadd.f32 %v904_v38, %v898_v5  ;;  %1631 = vpow2.f32 %v1448_v32 }
 0x117   :  { %v510_v51 = vpop.f32.mrb[26].mxu0  ;;  %v822_v49 = vmul.f32 %v1618_v15, %v2115_v63  ;;  %v439_v12 = vpop.f32.mrb[27].mxu1  ;;  %v1449_v46 = vmul.f32 -1.442695, %v761_v0  ;;  %1633 = vtanh.f32 %v962_v55  ;;  %v1110_v22 = vadd.f32 %v2222_v6, %v437_v23 }
 0x118   :  { %v2330_v54 = vpop.f32.mrb[27].mxu0  ;;  %v1620_v18 = vpop.eup %1619  ;;  %v1187_v37 = vadd.f32 %v2296_v40, %v439_v12  ;;  %v1264_v39 = vadd.f32 %v2293_v30, %v510_v51 }
 0x119   :  { %v829_v21 = vadd.f32 %v828_v20, %v822_v49  ;;  %v976_v8 = vmul.f32 %v1620_v18, %v2115_v63  ;;  %v1622_v47 = vpop.eup %1621  ;;  %v1233_v14 = vpop.permute.xlu1 %1232  ;;  %1635 = vpow2.f32 %v1449_v46 }
 0x11a   :  { %v899_v1 = vmul.f32 %v1622_v47, %v2115_v63  ;;  %v1156_v26 = vpop.permute.xlu0 %1155  ;;  %v443_v25 = vpop.f32.mrb[28].mxu1  ;;  %1637 = vtanh.f32 %v885_v36  ;;  %v1263_v55 = vadd.f32 %v1233_v14, %v506_v35 }
 0x11b   :  { %v983_v52 = vadd.f32 %v982_v29, %v976_v8  ;;  %v1624_v38 = vpop.eup %1623  ;;  %v1186_v48 = vadd.f32 %v1156_v26, %v435_v58  ;;  %v1111_v33 = vadd.f32 %v2283_v17, %v443_v25  ;;  %v445_v40 = vpop.f32.mrb[29].mxu1  ;;  %1639 = vtanh.f32 %v1036_v24 }
 0x11c   :  { %v906_v13 = vadd.f32 %v905_v57, %v899_v1  ;;  %v823_v19 = vmul.f32 %v1624_v38, %v2124_v4  ;;  %v447_v20 = vpop.f32.mrb[30].mxu1  ;;  %v2338_v16 = vpop.f32.mrb[28].mxu0  ;;  %1641 = vtanh.f32 %v1109_v34 }
 0x11d   :  { %v1626_v42 = vpop.eup %1625  ;;  %v449_v50 = vpop.f32.mrb[31].mxu1  ;;  %1643 = vtanh.f32 %v1186_v48 }
 0x11e   :  { %v2341_v31 = vpop.f32.mrb[29].mxu0  ;;  %v830_v36 = vadd.f32 %v829_v21, %v823_v19  ;;  %v977_v58 = vmul.f32 %v1626_v42, %v2124_v4  ;;  %v1022_v17 = vpop.permute.xlu1 %1021  ;;  %1645 = vtanh.f32 %v1110_v22  ;;  %v1112_v19 = vadd.f32 %v2232_v9, %v447_v20 }
 0x11f   :  { %v2344_v43 = vpop.f32.mrb[30].mxu0  ;;  %v1628_v29 = vpop.eup %1627  ;;  %1647 = vtanh.f32 %v1264_v39 }
 0x120   :  { %v2346_v6 = vpop.f32.mrb[31].mxu0  ;;  %v984_v5 = vadd.f32 %v983_v52, %v977_v58  ;;  %v900_v15 = vmul.f32 %v1628_v29, %v2124_v4  ;;  %v1630_v30 = vpop.eup %1629  ;;  %1649 = vtanh.f32 %v1187_v37  ;;  %v1188_v52 = vadd.f32 %v2323_v10, %v445_v40 }
 0x121   :  { %v1632_v24 = vpop.eup %1631  ;;  %v824_v51 = vmul.f32 %v1630_v30, %v2122_v3  ;;  %v1168_v32 = vpop.permute.xlu0 %1167  ;;  %1651 = vtanh.f32 %v1263_v55 }
 0x122   :  { %v907_v23 = vadd.f32 %v906_v13, %v900_v15  ;;  %v453_v34 = vpop.f32.mrb[32].mxu1  ;;  %v1634_v0 = vpop.eup %1633  ;;  %v688_v57 = vadd.f32 1.0, %v1632_v24 }
 0x123   :  { %v2350_v49 = vpop.f32.mrb[32].mxu0  ;;  %v1095_v12 = vpop.permute.xlu1 %1094  ;;  %v831_v46 = vadd.f32 %v830_v36, %v824_v51  ;;  %v978_v21 = vmul.f32 %v1634_v0, %v2122_v3 }
 0x124   :  { %v1636_v18 = vpop.eup %1635  ;;  %v455_v35 = vpop.f32.mrb[33].mxu1  ;;  %1653 = vrcp.f32 %v688_v57  ;;  %v1037_v57 = vadd.f32 %v1022_v17, %v2286_v44 }
 0x125   :  { %v2353_v8 = vpop.f32.mrb[33].mxu0  ;;  %v1638_v47 = vpop.eup %1637  ;;  %v765_v14 = vadd.f32 1.0, %v1636_v18  ;;  %v832_v1 = vrot.slane %v831_v46, 4  ;;  %v985_v26 = vadd.f32 %v984_v5, %v978_v21  ;;  %1655 = vtanh.f32 %v1111_v33 }
 0x126   :  { %v2356_v37 = vpop.f32.mrb[34].mxu0  ;;  %v901_v25 = vmul.f32 %v1638_v47, %v2122_v3  ;;  %v2361_v48 = vpop.f32.mrb[34].mxu1  ;;  %v1189_v33 = vadd.f32 %v1168_v32, %v449_v50  ;;  %v1113_v47 = vadd.f32 %v1095_v12, %v453_v34 }
 0x127   :  { %v2359_v38 = vpop.f32.mrb[35].mxu0  ;;  %v1640_v13 = vpop.eup %1639  ;;  %1657 = vrcp.f32 %v765_v14  ;;  %v833_v39 = vadd.f32 %v832_v1, %v831_v46  ;;  %v986_v10 = vrot.slane %v985_v26, 4 }
 0x128   :  { %v2364_v22 = vpop.f32.mrb[35].mxu1  ;;  %v1642_v42 = vpop.eup %1641  ;;  %v908_v40 = vadd.f32 %v907_v23, %v901_v25  ;;  %v1052_v36 = vmul.f32 %v1640_v13, %v2117_v2  ;;  %1659 = vtanh.f32 %v1188_v52 }
 0x129   :  { %v1241_v58 = vpop.permute.xlu1 %1240  ;;  %v1644_v29 = vpop.eup %1643  ;;  %v834_v15 = vrot.slane %v833_v39, 2  ;;  %v987_v55 = vadd.f32 %v986_v10, %v985_v26  ;;  %v1125_v0 = vmul.f32 %v1642_v42, %v2105_v60  ;;  %1661 = vtanh.f32 %v1112_v19 }
 0x12a   :  { %v1646_v5 = vpop.eup %1645  ;;  %v909_v30 = vrot.slane %v908_v40, 4  ;;  %v2368_v24 = vadd.f32 %v2311_v53, %v1052_v36  ;;  %v1172_v9 = vpop.permute.xlu0 %1171  ;;  %v1202_v1 = vmul.f32 %v1644_v29, %v2105_v60  ;;  %1663 = vtanh.f32 %v1189_v33 }
 0x12b   :  { %v2370_v20 = vpop.f32.mrb[36].mxu1  ;;  %v1648_v51 = vpop.eup %1647  ;;  %v1126_v23 = vmul.f32 %v1646_v5, %v2103_v59  ;;  %v835_v46 = vadd.f32 %v834_v15, %v833_v39  ;;  %v988_v21 = vrot.slane %v987_v55, 2  ;;  %v1190_v10 = vadd.f32 %v1172_v9, %v455_v35 }
 0x12c   :  { %v2375_v18 = vpop.f32.mrb[36].mxu0  ;;  %v2377_v50 = vpop.f32.mrb[37].mxu1  ;;  %v910_v53 = vadd.f32 %v909_v30, %v908_v40  ;;  %v1280_v36 = vmul.f32 %v1648_v51, %v2103_v59  ;;  %1665 = vtanh.f32 %v1037_v57  ;;  %v1265_v35 = vadd.f32 %v1241_v58, %v2338_v16 }
 0x12d   :  { %v1650_v32 = vpop.eup %1649  ;;  %v2379_v14 = vpop.f32.mrb[37].mxu0  ;;  %v1133_v26 = vadd.f32 %v1126_v23, %v1125_v0  ;;  %v836_v19 = vrot.slane %v835_v46, 1  ;;  %v989_v42 = vadd.f32 %v988_v21, %v987_v55  ;;  %1667 = vtanh.f32 %v1113_v47 }
 0x12e   :  { %2485 = vst [vmem:[#allocation5_spill] sm:$0xff] %v2379_v14  ;;  %v2381_v52 = vpop.f32.mrb[38].mxu1  ;;  %v1203_v25 = vmul.f32 %v1650_v32, %v2103_v59  ;;  %v2385_v44 = vpop.f32.mrb[38].mxu0  ;;  %v911_v39 = vrot.slane %v910_v53, 2  ;;  %1669 = vtanh.f32 %v1190_v10  ;;  %v1341_v57 = vadd.f32 %v2238_v45, %v2330_v54 }
 0x12f   :  { %v1310_v17 = vpop.permute.xlu1 %1309  ;;  %v1652_v13 = vpop.eup %1651  ;;  %v837_v15 = vadd.f32 %v836_v19, %v835_v46  ;;  %v990_v30 = vrot.slane %v989_v42, 1  ;;  %1671 = vtanh.f32 %v1265_v35  ;;  %v1039_v45 = vadd.f32 %v2272_v56, %v2306_v28 }
 0x130   :  { %v2387_v40 = vpop.f32.mrb[39].mxu1  ;;  %v2389_v34 = vpop.f32.mrb[39].mxu0  ;;  %v1210_v29 = vadd.f32 %v1203_v25, %v1202_v1  ;;  %v1279_v5 = vmul.f32 %v1652_v13, %v2105_v60  ;;  %v912_v0 = vadd.f32 %v911_v39, %v910_v53  ;;  %v1340_v16 = vadd.f32 %v1310_v17, %v2321_v27 }
 0x131   :  { %v1654_v12 = vpop.eup %1653  ;;  %v838_v9 = vadd.f32 %v837_v15, %v2129_v7  ;;  %v991_v21 = vadd.f32 %v990_v30, %v989_v42  ;;  %v1267_v27 = vadd.f32 %v2315_v41, %v2350_v49 }
 0x132   :  { %v1656_v33 = vpop.eup %1655  ;;  %v1287_v32 = vadd.f32 %v1280_v36, %v1279_v5  ;;  %v913_v14 = vrot.slane %v912_v0, 1 }
 0x133   :  { %v1658_v23 = vpop.eup %1657  ;;  %v1127_v55 = vmul.f32 %v1656_v33, %v2111_v62  ;;  %v1026_v51 = vpop.permute.xlu1 %1025  ;;  %v1450_v25 = vmul.f32 -1.442695, %v838_v9  ;;  %v992_v53 = vadd.f32 %v991_v21, %v2129_v7 }
 0x134   :  { %v1660_v1 = vpop.eup %1659  ;;  %v914_v13 = vadd.f32 %v913_v14, %v912_v0  ;;  %v2401_v58 = vadd.f32 %v1658_v23, %v1654_v12 }
 0x135   :  { %v1134_v46 = vadd.f32 %v1133_v26, %v1127_v55  ;;  %v1204_v19 = vmul.f32 %v1660_v1, %v2111_v62  ;;  %v1662_v47 = vpop.eup %1661  ;;  %1673 = vpow2.f32 %v1450_v25  ;;  %v1452_v42 = vmul.f32 -1.442695, %v992_v53 }
 0x136   :  { %v915_v39 = vadd.f32 %v914_v13, %v2129_v7  ;;  %v1664_v36 = vpop.eup %1663  ;;  %1675 = vtanh.f32 %v1341_v57  ;;  %v1128_v54 = vmul.f32 %v1662_v47, %v2109_v61 }
 0x137   :  { %v1211_v10 = vadd.f32 %v1210_v29, %v1204_v19  ;;  %v1099_v14 = vpop.permute.xlu1 %1098  ;;  %1677 = vpow2.f32 %v1452_v42  ;;  %v1205_v5 = vmul.f32 %v1664_v36, %v2109_v61  ;;  %v1666_v17 = vpop.eup %1665  ;;  %v1038_v29 = vadd.f32 %v1026_v51, %v2301_v11 }
 0x138   :  { %v1451_v26 = vmul.f32 -1.442695, %v915_v39  ;;  %v1135_v12 = vadd.f32 %v1134_v46, %v1128_v54  ;;  %1679 = vtanh.f32 %v1340_v16  ;;  %v1053_v56 = vmul.f32 %v1666_v17, %v2115_v63  ;;  %v1668_v15 = vpop.eup %1667  ;;  %v1180_v19 = vpop.permute.xlu0 %1179 }
 0x139   :  { %v1212_v33 = vadd.f32 %v1211_v10, %v1205_v5  ;;  %v1114_v28 = vadd.f32 %v1099_v14, %v2361_v48  ;;  %v1670_v30 = vpop.eup %1669  ;;  %v1129_v23 = vmul.f32 %v1668_v15, %v2117_v2 }
 0x13a   :  { %1681 = vpow2.f32 %v1451_v26  ;;  %v1060_v0 = vadd.f32 %v2368_v24, %v1053_v56  ;;  %v1206_v49 = vmul.f32 %v1670_v30, %v2117_v2  ;;  %v1672_v35 = vpop.eup %1671 }
 0x13b   :  { %1683 = vtanh.f32 %v1039_v45  ;;  %v1245_v41 = vpop.permute.xlu1 %1244  ;;  %v1136_v55 = vadd.f32 %v1135_v12, %v1129_v23  ;;  %v1281_v21 = vmul.f32 %v1672_v35, %v2111_v62 }
 0x13c   :  { %1685 = vtanh.f32 %v1267_v27  ;;  %v1266_v11 = vadd.f32 %v1245_v41, %v2344_v43  ;;  %v2417_v9 = vadd.f32 %v1212_v33, %v1206_v49  ;;  %v1184_v27 = vpop.permute.xlu0 %1183 }
 0x13d   :  { %1687 = vtanh.f32 %v1038_v29  ;;  %v1288_v46 = vadd.f32 %v1287_v32, %v1281_v21  ;;  %v1193_v29 = vadd.f32 %v1184_v27, %v2387_v40 }
 0x13e   :  { %1689 = vtanh.f32 %v1114_v28 }
 0x13f   :  { %1691 = vtanh.f32 %v1266_v11  ;;  %v1674_v48 = vpop.eup %1673  ;;  %v1318_v1 = vpop.permute.xlu1 %1317 }
 0x140   :  { %v1676_v51 = vpop.eup %1675  ;;  %v842_v24 = vadd.f32 1.0, %v1674_v48  ;;  %v1342_v25 = vadd.f32 %v1318_v1, %v2341_v31 }
 0x141   :  { %v1678_v57 = vpop.eup %1677  ;;  %v1357_v43 = vmul.f32 %v1676_v51, %v2103_v59  ;;  %v1192_v59 = vadd.f32 %v1180_v19, %v2377_v50 }
 0x142   :  { %v1680_v53 = vpop.eup %1679  ;;  %1693 = vrcp.f32 %v842_v24  ;;  %v996_v16 = vadd.f32 1.0, %v1678_v57 }
 0x143   :  { %v1356_v47 = vmul.f32 %v1680_v53, %v2105_v60  ;;  %1695 = vtanh.f32 %v1342_v25  ;;  %v1103_v45 = vpop.permute.xlu1 %1102 }
 0x144   :  { %v1682_v13 = vpop.eup %1681  ;;  %v1115_v32 = vadd.f32 %v1103_v45, %v2370_v20 }
 0x145   :  { %v1684_v42 = vpop.eup %1683  ;;  %v919_v39 = vadd.f32 1.0, %v1682_v13  ;;  %v1364_v36 = vadd.f32 %v1357_v43, %v1356_v47 }
 0x146   :  { %v1686_v10 = vpop.eup %1685  ;;  %v1055_v5 = vmul.f32 %v1684_v42, %v2122_v3  ;;  %v1330_v42 = vpop.permute.xlu0 %1329 }
 0x147   :  { %v1688_v54 = vpop.eup %1687  ;;  %1697 = vrcp.f32 %v919_v39  ;;  %v1176_v20 = vpop.permute.xlu1 %1175  ;;  %v1283_v56 = vmul.f32 %v1686_v10, %v2117_v2 }
 0x148   :  { %v1690_v31 = vpop.eup %1689  ;;  %v1054_v14 = vmul.f32 %v1688_v54, %v2124_v4  ;;  %1699 = vrcp.f32 %v996_v16  ;;  %v1191_v30 = vadd.f32 %v1176_v20, %v2364_v22 }
 0x149   :  { %v1692_v26 = vpop.eup %1691  ;;  %v1130_v60 = vmul.f32 %v1690_v31, %v2115_v63  ;;  %1701 = vtanh.f32 %v1115_v32 }
 0x14a   :  { %v1061_v17 = vadd.f32 %v1060_v0, %v1054_v14  ;;  %v1282_v12 = vmul.f32 %v1692_v26, %v2109_v61  ;;  %1703 = vtanh.f32 %v1192_v59 }
 0x14b   :  { %v1137_v33 = vadd.f32 %v1136_v55, %v1130_v60  ;;  %1705 = vtanh.f32 %v1191_v30 }
 0x14c   :  { %v1062_v28 = vadd.f32 %v1061_v17, %v1055_v5  ;;  %v1289_v15 = vadd.f32 %v1288_v46, %v1282_v12  ;;  %v1694_v50 = vpop.eup %1693  ;;  %1707 = vtanh.f32 %v1193_v29  ;;  %v1322_v55 = vpop.permute.xlu1 %1321 }
 0x14d   :  { %v1696_v23 = vpop.eup %1695  ;;  %v845_v0 = vadd.f32 %v1694_v50, %v2401_v58  ;;  %v1343_v21 = vadd.f32 %v1322_v55, %v2346_v6  ;;  %v1338_v50 = vpop.permute.xlu0 %1337 }
 0x14e   :  { %v1063_v41 = vrot.slane %v1062_v28, 4  ;;  %v2432_v49 = vadd.f32 %v1289_v15, %v1283_v56  ;;  %v1358_v11 = vmul.f32 %v1696_v23, %v2111_v62 }
 0x14f   :  { %1709 = vtanh.f32 %v1343_v21 }
 0x150   :  { %v1064_v40 = vadd.f32 %v1063_v41, %v1062_v28  ;;  %v1365_v48 = vadd.f32 %v1364_v36, %v1358_v11 }
 0x151   :  { %v1698_v35 = vpop.eup %1697  ;;  %v1107_v58 = vpop.permute.xlu1 %1106 }
 0x152   :  { %v1700_v51 = vpop.eup %1699  ;;  %v1065_v22 = vrot.slane %v1064_v40, 2  ;;  %v922_v24 = vadd.f32 %v1698_v35, %v845_v0  ;;  %v1116_v13 = vadd.f32 %v1107_v58, %v2381_v52  ;;  %v1345_v52 = vadd.f32 %v1330_v42, %v2359_v38 }
 0x153   :  { %v1702_v1 = vpop.eup %1701 }
 0x154   :  { %v1066_v57 = vadd.f32 %v1065_v22, %v1064_v40  ;;  %v1131_v46 = vmul.f32 %v1702_v1, %v2124_v4  ;;  %v2438_v25 = vadd.f32 %v1700_v51, %v922_v24  ;;  %v1704_v43 = vpop.eup %1703  ;;  %1711 = vtanh.f32 %v1116_v13 }
 0x155   :  { %v1706_v19 = vpop.eup %1705  ;;  %v1208_v36 = vmul.f32 %v1704_v43, %v2124_v4 }
 0x156   :  { %v1067_v53 = vrot.slane %v1066_v57, 1  ;;  %v1138_v62 = vadd.f32 %v1137_v33, %v1131_v46  ;;  %v1207_v6 = vmul.f32 %v1706_v19, %v2115_v63  ;;  %v1708_v16 = vpop.eup %1707  ;;  %v1253_v10 = vpop.permute.xlu1 %1252  ;;  %v2486_v46 = vld [vmem:[#allocation5_spill] sm:$0xff] }
 0x157   :  { %v1268_v54 = vadd.f32 %v1253_v10, %v2356_v37  ;;  %v1209_v14 = vmul.f32 %v1708_v16, %v2122_v3 }
 0x158   :  { %v1068_v47 = vadd.f32 %v1067_v53, %v1066_v57  ;;  %v1214_v45 = vadd.f32 %v2417_v9, %v1207_v6 }
 0x159   :  { %v1710_v31 = vpop.eup %1709  ;;  %1713 = vtanh.f32 %v1268_v54 }
 0x15a   :  { %v1069_v39 = vadd.f32 %v1068_v47, %v2129_v7  ;;  %v1215_v26 = vadd.f32 %v1214_v45, %v1208_v36  ;;  %v1359_v59 = vmul.f32 %v1710_v31, %v2109_v61 }
 0x15b   :  { %v1326_v5 = vpop.permute.xlu1 %1325 }
 0x15c   :  { %v1453_v32 = vmul.f32 -1.442695, %v1069_v39  ;;  %v1216_v60 = vadd.f32 %v1215_v26, %v1209_v14  ;;  %v1366_v27 = vadd.f32 %v1365_v48, %v1359_v59  ;;  %v1344_v17 = vadd.f32 %v1326_v5, %v2353_v8 }
 0x15d   :  { %v1347_v48 = vadd.f32 %v1338_v50, %v2389_v34 }
 0x15e   :  { %1715 = vpow2.f32 %v1453_v32  ;;  %v1217_v9 = vrot.slane %v1216_v60, 4  ;;  %v1712_v12 = vpop.eup %1711 }
 0x15f   :  { %1717 = vtanh.f32 %v1345_v52  ;;  %v1132_v29 = vmul.f32 %v1712_v12, %v2122_v3 }
 0x160   :  { %1719 = vtanh.f32 %v1344_v17  ;;  %v1218_v37 = vadd.f32 %v1217_v9, %v1216_v60  ;;  %v1257_v38 = vpop.permute.xlu1 %1256 }
 0x161   :  { %v1139_v20 = vadd.f32 %v1138_v62, %v1132_v29  ;;  %v1269_v56 = vadd.f32 %v1257_v38, %v2375_v18 }
 0x162   :  { %v1219_v33 = vrot.slane %v1218_v37, 2 }
 0x163   :  { %v1714_v28 = vpop.eup %1713  ;;  %v1140_v61 = vrot.slane %v1139_v20, 4  ;;  %1721 = vtanh.f32 %v1269_v56 }
 0x164   :  { %v1220_v15 = vadd.f32 %v1219_v33, %v1218_v37  ;;  %v1284_v8 = vmul.f32 %v1714_v28, %v2115_v63  ;;  %v1261_v23 = vpop.permute.xlu1 %1260 }
 0x165   :  { %v1141_v0 = vadd.f32 %v1140_v61, %v1139_v20  ;;  %v1270_v11 = vadd.f32 %v1261_v23, %v2385_v44 }
 0x166   :  { %v1221_v41 = vrot.slane %v1220_v15, 1  ;;  %v1291_v55 = vadd.f32 %v2432_v49, %v1284_v8 }
 0x167   :  { %v1142_v21 = vrot.slane %v1141_v0, 2  ;;  %1723 = vtanh.f32 %v1270_v11 }
 0x168   :  { %v1716_v30 = vpop.eup %1715  ;;  %v1222_v18 = vadd.f32 %v1221_v41, %v1220_v15 }
 0x169   :  { %v1073_v40 = vadd.f32 1.0, %v1716_v30  ;;  %v1718_v35 = vpop.eup %1717  ;;  %v1143_v22 = vadd.f32 %v1142_v21, %v1141_v0  ;;  %v1334_v1 = vpop.permute.xlu1 %1333 }
 0x16a   :  { %v1720_v51 = vpop.eup %1719  ;;  %v1223_v57 = vadd.f32 %v1222_v18, %v2129_v7  ;;  %v1346_v58 = vadd.f32 %v1334_v1, %v2486_v46  ;;  %v1361_v44 = vmul.f32 %v1718_v35, %v2115_v63 }
 0x16b   :  { %1725 = vrcp.f32 %v1073_v40  ;;  %v1360_v24 = vmul.f32 %v1720_v51, %v2117_v2  ;;  %v1144_v49 = vrot.slane %v1143_v22, 1 }
 0x16c   :  { %1727 = vtanh.f32 %v1347_v48  ;;  %v1455_v43 = vmul.f32 -1.442695, %v1223_v57 }
 0x16d   :  { %v1367_v53 = vadd.f32 %v1366_v27, %v1360_v24  ;;  %1729 = vtanh.f32 %v1346_v58  ;;  %v1722_v34 = vpop.eup %1721  ;;  %v1145_v62 = vadd.f32 %v1144_v49, %v1143_v22 }
 0x16e   :  { %v1285_v19 = vmul.f32 %v1722_v34, %v2124_v4  ;;  %1731 = vpow2.f32 %v1455_v43 }
 0x16f   :  { %v1368_v13 = vadd.f32 %v1367_v53, %v1361_v44  ;;  %v1146_v47 = vadd.f32 %v1145_v62, %v2129_v7 }
 0x170   :  { %v1292_v2 = vadd.f32 %v1291_v55, %v1285_v19 }
 0x171   :  { %v1724_v6 = vpop.eup %1723  ;;  %v1454_v16 = vmul.f32 -1.442695, %v1146_v47 }
 0x172   :  { %v1286_v39 = vmul.f32 %v1724_v6, %v2122_v3 }
 0x173   :  { %1733 = vpow2.f32 %v1454_v16 }
 0x174   :  { %v1293_v10 = vadd.f32 %v1292_v2, %v1286_v39 }
 0x175   :  { %v1726_v42 = vpop.eup %1725 }
 0x176   :  { %v1076_v63 = vadd.f32 %v1726_v42, %v2438_v25  ;;  %v1728_v36 = vpop.eup %1727  ;;  %v1294_v54 = vrot.slane %v1293_v10, 4 }
 0x177   :  { %v1730_v45 = vpop.eup %1729  ;;  %v1363_v52 = vmul.f32 %v1728_v36, %v2122_v3 }
 0x178   :  { %v1362_v32 = vmul.f32 %v1730_v45, %v2124_v4  ;;  %v1295_v31 = vadd.f32 %v1294_v54, %v1293_v10  ;;  %v1732_v59 = vpop.eup %1731 }
 0x179   :  { %v1227_v37 = vadd.f32 1.0, %v1732_v59 }
 0x17a   :  { %v1369_v14 = vadd.f32 %v1368_v13, %v1362_v32  ;;  %v1296_v26 = vrot.slane %v1295_v31, 2 }
 0x17c   :  { %v1370_v60 = vadd.f32 %v1369_v14, %v1363_v52  ;;  %v1297_v5 = vadd.f32 %v1296_v26, %v1295_v31 }
 0x17d   :  { %v1734_v27 = vpop.eup %1733 }
 0x17e   :  { %v1371_v17 = vrot.slane %v1370_v60, 4  ;;  %v1298_v9 = vrot.slane %v1297_v5, 1  ;;  %v1150_v12 = vadd.f32 1.0, %v1734_v27 }
 0x180   :  { %v1372_v25 = vadd.f32 %v1371_v17, %v1370_v60  ;;  %v1299_v29 = vadd.f32 %v1298_v9, %v1297_v5  ;;  %1735 = vrcp.f32 %v1150_v12 }
 0x181   :  { %1737 = vrcp.f32 %v1227_v37 }
 0x182   :  { %v1373_v38 = vrot.slane %v1372_v25, 2  ;;  %v1300_v4 = vadd.f32 %v1299_v29, %v2129_v7 }
 0x184   :  { %v1374_v33 = vadd.f32 %v1373_v38, %v1372_v25  ;;  %v1456_v20 = vmul.f32 -1.442695, %v1300_v4 }
 0x186   :  { %v1375_v3 = vrot.slane %v1374_v33, 1  ;;  %1739 = vpow2.f32 %v1456_v20 }
 0x188   :  { %v1376_v56 = vadd.f32 %v1375_v3, %v1374_v33 }
 0x18a   :  { %v1377_v28 = vadd.f32 %v1376_v56, %v2129_v7  ;;  %v1736_v15 = vpop.eup %1735 }
 0x18b   :  { %v1153_v61 = vadd.f32 %v1736_v15, %v1076_v63  ;;  %v1738_v50 = vpop.eup %1737 }
 0x18c   :  { %v1457_v30 = vmul.f32 -1.442695, %v1377_v28 }
 0x18d   :  { %v1230_v8 = vadd.f32 %v1738_v50, %v1153_v61 }
 0x18e   :  { %1741 = vpow2.f32 %v1457_v30 }
 0x190   :  { %v1740_v23 = vpop.eup %1739 }
 0x191   :  { %v1304_v41 = vadd.f32 1.0, %v1740_v23 }
 0x193   :  { %1743 = vrcp.f32 %v1304_v41 }
 0x198   :  { %v1742_v0 = vpop.eup %1741 }
 0x199   :  { %v1381_v11 = vadd.f32 1.0, %v1742_v0 }
 0x19b   :  { %1745 = vrcp.f32 %v1381_v11 }
 0x19d   :  { %v1744_v40 = vpop.eup %1743 }
 0x19e   :  { %v1307_v55 = vadd.f32 %v1744_v40, %v1230_v8 }
 0x1a5   :  { %v1746_v35 = vpop.eup %1745 }
 0x1a6   :  { %v1384_v48 = vadd.f32 %v1746_v35, %v1307_v55 }
 0x1a8   :  { %v1385_v18 = vmul.f32 0.1, %v1384_v48 }
 0x1aa   :  { %v1386_v21 = vmul.f32 5.0, %v1385_v18 }
 0x1ac   :  { %v1387_v7 = vadd.f32 85.0, %v1386_v21 }
 0x1ae   :  { %v1388_v51 = vmax.f32 %v1387_v7, 0.0 }
 0x1b0   :  { %1389 = vst [vmem:[#allocation2] sm:$0x1] %v1388_v51 }
 0x1b1   :  { %1758 = shalt.err (!%p1755_p4)
}
 0x1b2   :  { %s1759_s19 = scalar_lea.hbm %s2484_s4, 16 }
 0x1b3   :  { %p1760_p5 = scmp.ne.s32.totalorder %s2484_s4, %s1759_s19  ;;  %p1763_p6 = scmp.lt.u32.totalorder %s1759_s19, %s2484_s4 }
 0x1b5   :  { %p1765_p7 = pnand %p1763_p6, %p1760_p5 }
 0x1b7   :  { %1768 = shalt.err (!%p1765_p7)
}
 0x1b8   :  { %1399 = dma.vmem_to_hbm [thread:$0]  %s1397_s3, 16, %s2484_s4, [#allocation3]  }
 0x1b9   :  { %1769 = dma.done.wait [#allocation3], 16  }
 0x1ba   :  { %1770 = vsyncadd [#allocation3], 4294967280 }
 0x1bb   :  { %1403 = vsyncpa [#allocation3], 1 }

</bundles_post_ra>
